<compile_context>
chip_gen: v7x
topology: tpu7x:2x2x1
jax: 0.10.0
libtpu: 0.0.40
codegen_flags: <defaults>
</compile_context>

<pallas_src>
import functools

import numpy as np
import jax
import jax.numpy as jnp
from jax.experimental import pallas as pl
from jax.experimental.pallas import tpu as pltpu


def _istft_head_kernel(x_ref, w_ref, b_ref, bre_ref, bim_ref, head_ref, tail_ref,
                       o_ref, *, n_fft, hop, f_pad):
    """block_b batch elems: linear -> exp/clip/cos/sin -> irfft(matmul) -> OLA."""
    block_b, L, H = x_ref.shape
    r = n_fft // hop                        # frames overlapping any given sample
    M = block_b * L

    # ---- linear projection on the MXU: bf16 x bf16 -> f32 accumulation ----
    x2d = x_ref[...].reshape(M, H).astype(w_ref.dtype)
    proj = jnp.dot(x2d, w_ref[...], preferred_element_type=jnp.float32) + b_ref[...]

    # ---- mag / phase (lane-aligned split at f_pad, a multiple of 128) ----
    mag = jnp.minimum(jnp.exp(proj[:, :f_pad]), 100.0)       # clip(exp, max=100)
    phase = proj[:, f_pad:]
    re = (mag * jnp.cos(phase)).astype(bre_ref.dtype)        # bf16 for the MXU
    im = (mag * jnp.sin(phase)).astype(bim_ref.dtype)

    # ---- fused irfft + hann window + interior COLA norm: two MXU dots ----
    frames = jnp.dot(re, bre_ref[...], preferred_element_type=jnp.float32)
    frames = frames + jnp.dot(im, bim_ref[...], preferred_element_type=jnp.float32)

    # ---- overlap-add in the lane-aligned 3-D layout (rows of `hop` samples) ----
    # frame t, in-frame sample m*hop + k  ->  output row t + m, lane k
    fr3 = frames.reshape(block_b, L, n_fft)                   # split leading dim only
    o_ref[:, 0:L, :] = fr3[:, :, 0:hop]                       # m = 0 slab: plain store
    if r > 1:
        o_ref[:, L:L + r - 1, :] = jnp.zeros((block_b, r - 1, hop), jnp.float32)
        for m in range(1, r):
            o_ref[:, m:m + L, :] += fr3[:, :, m * hop:(m + 1) * hop]

        # ---- COLA edge correction (interior envelope already in the basis) ----
        o_ref[:, 0:r - 1, :] = o_ref[:, 0:r - 1, :] * head_ref[...]
        o_ref[:, L:L + r - 1, :] = o_ref[:, L:L + r - 1, :] * tail_ref[...]


def istft_head_forward(x, w, b, basis_re, basis_im, head_corr, tail_corr, *,
                       n_fft, hop, pad, f_pad, block_b=None, max_rows=2048):
    B, L, H = x.shape
    assert n_fft % hop == 0, "slab OLA requires hop | n_fft"
    r = n_fft // hop
    assert L >= r, "need at least r = n_fft//hop frames"
    if block_b is None:
        # Size the block from a VMEM row budget (~12 KB of intermediates / row at
        # production sizes).  On v7x additionally prefer B // block_b >= 2 so both
        # TensorCores get a grid step.
        divisors = [d for d in range(1, B + 1) if B % d == 0]
        fitting = [d for d in divisors if d * L <= max_rows]
        block_b = max(fitting) if fitting else 1
    assert B % block_b == 0, "B must be divisible by block_b"
    grid = (B // block_b,)
    out_rows = L + r - 1
    out_len = out_rows * hop

    kernel = functools.partial(_istft_head_kernel, n_fft=n_fft, hop=hop, f_pad=f_pad)

    def call(single_buffer):
        def const_spec(shape):
            idx = lambda i: (0,) * len(shape)
            if single_buffer:
                # Grid-invariant operand: single-buffer it (no point double-buffering).
                return pl.BlockSpec(shape, idx, pipeline_mode=pl.Buffered(1))
            return pl.BlockSpec(shape, idx)

        return pl.pallas_call(
            kernel,
            out_shape=jax.ShapeDtypeStruct((B, out_rows, hop), jnp.float32),
            grid=grid,
            in_specs=[
                pl.BlockSpec((block_b, L, H), lambda i: (i, 0, 0)),   # x
                const_spec(tuple(w.shape)),                           # packed W (bf16)
                const_spec(tuple(b.shape)),                           # packed bias (f32)
                const_spec(tuple(basis_re.shape)),                    # cos basis (bf16)
                const_spec(tuple(basis_im.shape)),                    # sin basis (bf16)
                const_spec(tuple(head_corr.shape)),                   # head edge corr
                const_spec(tuple(tail_corr.shape)),                   # tail edge corr
            ],
            out_specs=pl.BlockSpec((block_b, out_rows, hop), lambda i: (i, 0, 0)),
            compiler_params=pltpu.CompilerParams(
                dimension_semantics=("parallel",),
                # 48 MiB: above scoped defaults, inside v7x's 64 MiB physical.
                # Raise toward 64-96 MiB on v5e/v6e when growing block_b*L.
                vmem_limit_bytes=48 * 1024 * 1024,
            ),
        )(x, w, b, basis_re, basis_im, head_corr, tail_corr)

    try:
        y3 = call(single_buffer=True)
    except Exception:
        # pipeline_mode=pl.Buffered(1) unsupported on this JAX: fall back to defaults.
        y3 = call(single_buffer=False)

    # Free reshape + "same"-padding crop in XLA.
    y = y3.reshape(B, out_len)
    return y[:, pad:out_len - pad]


def make_istft_head_params(key, dim, n_fft, f_pad):
    """Synthetic nn.Linear(dim, n_fft + 2) params, repacked into the F_pad layout."""
    F = n_fft // 2 + 1
    out_dim = n_fft + 2                        # == 2 * F
    k1, k2 = jax.random.split(key)
    # torch weight is (out_dim, dim); we store its transpose for x @ W.
    w_full = jax.random.normal(k1, (dim, out_dim), jnp.float32) * 0.05
    b_full = jax.random.normal(k2, (out_dim,), jnp.float32) * 0.05
    # lane-aligned repack: [ mag cols | zeros | phase cols | zeros ]
    w = jnp.zeros((dim, 2 * f_pad), jnp.float32)
    w = w.at[:, :F].set(w_full[:, :F]).at[:, f_pad:f_pad + F].set(w_full[:, F:])
    b = jnp.zeros((1, 2 * f_pad), jnp.float32)
    b = b.at[0, :F].set(b_full[:F]).at[0, f_pad:f_pad + F].set(b_full[F:])
    return w.astype(jnp.bfloat16), b, w_full, b_full


def make_istft_constants(n_fft, hop, num_frames, f_pad):
    """irfft cos/sin bases (hann window + interior COLA env folded in), edge corrections."""
    F = n_fft // 2 + 1
    r = n_fft // hop
    assert n_fft % hop == 0 and num_frames >= r
    n = np.arange(n_fft)
    k = np.arange(F)
    # periodic Hann window (torch.hann_window default, periodic=True)
    win = 0.5 * (1.0 - np.cos(2.0 * np.pi * n / n_fft))
    ang = 2.0 * np.pi * np.outer(k, n) / n_fft                    # (F, n_fft)
    c = np.full((F, 1), 2.0)
    c[0] = 1.0
    c[-1] = 1.0
    bc = (c * np.cos(ang) / n_fft) * win[None, :]                 # Re(S) basis
    bs = (-c * np.sin(ang) / n_fft) * win[None, :]                # Im(S) basis

    out_len = (num_frames - 1) * hop + n_fft
    env = np.zeros(out_len)
    for t in range(num_frames):
        env[t * hop:t * hop + n_fft] += win ** 2
    env = np.maximum(env, 1e-11)   # clamp only affects positions that get cropped

    # Interior (full-coverage) envelope is identical for rows r-1..L-1; fold its
    # inverse into the basis columns (output lane == frame-sample index mod hop).
    interior = env[(r - 1) * hop:r * hop]                          # (hop,)
    inv_interior_tiled = np.tile(1.0 / interior, r)                # (n_fft,)
    bc = bc * inv_interior_tiled[None, :]
    bs = bs * inv_interior_tiled[None, :]

    basis_re = np.zeros((f_pad, n_fft), np.float32)
    basis_im = np.zeros((f_pad, n_fft), np.float32)
    basis_re[:F] = bc
    basis_im[:F] = bs

    # Edge corrections (relative to the interior envelope already in the basis).
    if r > 1:
        env3 = env.reshape(num_frames + r - 1, hop)
        head_corr = (interior[None, :] / env3[:r - 1]).astype(np.float32)
        tail_corr = (interior[None, :] / env3[num_frames:]).astype(np.float32)
    else:
        head_corr = np.ones((1, hop), np.float32)
        tail_corr = np.ones((1, hop), np.float32)

    pad = (n_fft - hop) // 2
    return (jnp.asarray(basis_re, jnp.bfloat16), jnp.asarray(basis_im, jnp.bfloat16),
            jnp.asarray(head_corr), jnp.asarray(tail_corr), pad)


def istft_head_reference(x, w, b, *, n_fft, hop):
    """Pure numpy reference reproducing the torch forward semantics."""
    x = np.asarray(x, np.float64)
    w = np.asarray(w, np.float64)
    b = np.asarray(b, np.float64)
    B, L, H = x.shape
    F = n_fft // 2 + 1
    proj = np.einsum('blh,hd->bld', x, w) + b                     # (B, L, n_fft+2)
    proj = np.swapaxes(proj, 1, 2)                                # (B, n_fft+2, L)
    mag = np.minimum(np.exp(proj[:, :F]), 100.0)
    p = proj[:, F:]
    S = mag * (np.cos(p) + 1j * np.sin(p))                        # (B, F, L)
    frames = np.fft.irfft(S, n=n_fft, axis=1)                     # (B, n_fft, L)
    n = np.arange(n_fft)
    win = 0.5 * (1.0 - np.cos(2.0 * np.pi * n / n_fft))
    frames = frames * win[None, :, None]
    out_len = (L - 1) * hop + n_fft
    y = np.zeros((B, out_len))
    env = np.zeros(out_len)
    for t in range(L):
        y[:, t * hop:t * hop + n_fft] += frames[:, :, t]
        env[t * hop:t * hop + n_fft] += win ** 2
    y = y / np.maximum(env, 1e-11)
    pad = (n_fft - hop) // 2
    return y[:, pad:out_len - pad]


if __name__ == "__main__":
    B, L, H = 2, 8, 32          # batch, frames, hidden dim
    n_fft, hop = 16, 4          # ISTFTHead(dim=H, n_fft=16, hop_length=4, padding="same")

    F = n_fft // 2 + 1
    f_pad = ((F + 127) // 128) * 128       # F padded to a multiple of 128 lanes

    key = jax.random.PRNGKey(0)
    kx, kp = jax.random.split(key)
    x = jax.random.normal(kx, (B, L, H), jnp.float32)
    w, b, w_full, b_full = make_istft_head_params(kp, H, n_fft, f_pad)
    basis_re, basis_im, head_corr, tail_corr, pad = make_istft_constants(
        n_fft, hop, L, f_pad)

    audio = istft_head_forward(x, w, b, basis_re, basis_im, head_corr, tail_corr,
                               n_fft=n_fft, hop=hop, pad=pad, f_pad=f_pad)
    audio = jax.block_until_ready(audio)

    ref = istft_head_reference(x, w_full, b_full, n_fft=n_fft, hop=hop)
    # tolerance reflects the bf16 projection + bf16 irfft matmuls (f32 accumulation).
    np.testing.assert_allclose(np.asarray(audio), ref, rtol=2e-2, atol=2e-2)
    print("KERNEL_OK")
</pallas_src>

<mosaic_0001>
module attributes {stable_mosaic.version = 11 : i64} {
  func.func @_istft_head_kernel(%arg0: i32, %arg1: memref<2x8x32xf32, #tpu.memory_space<vmem>>, %arg2: memref<32x256xbf16, #tpu.memory_space<vmem>>, %arg3: memref<1x256xf32, #tpu.memory_space<vmem>>, %arg4: memref<128x16xbf16, #tpu.memory_space<vmem>>, %arg5: memref<128x16xbf16, #tpu.memory_space<vmem>>, %arg6: memref<3x4xf32, #tpu.memory_space<vmem>>, %arg7: memref<3x4xf32, #tpu.memory_space<vmem>>, %arg8: memref<2x11x4xf32, #tpu.memory_space<vmem>>) attributes {dimension_semantics = [#tpu.dimension_semantics<parallel>], iteration_bounds = array<i64: 1>, scalar_prefetch = 0 : i64, scratch_operands = 0 : i64, tpu.core_type = #tpu.core_type<tc>, window_params = [{transform_indices = @transform_0, window_bounds = array<i64: 2, 8, 32>}, {pipeline_mode = #tpu.pipeline_mode<synchronous>, transform_indices = @transform_1, window_bounds = array<i64: 32, 256>}, {pipeline_mode = #tpu.pipeline_mode<synchronous>, transform_indices = @transform_2, window_bounds = array<i64: 1, 256>}, {pipeline_mode = #tpu.pipeline_mode<synchronous>, transform_indices = @transform_3, window_bounds = array<i64: 128, 16>}, {pipeline_mode = #tpu.pipeline_mode<synchronous>, transform_indices = @transform_4, window_bounds = array<i64: 128, 16>}, {pipeline_mode = #tpu.pipeline_mode<synchronous>, transform_indices = @transform_5, window_bounds = array<i64: 3, 4>}, {pipeline_mode = #tpu.pipeline_mode<synchronous>, transform_indices = @transform_6, window_bounds = array<i64: 3, 4>}, {transform_indices = @transform_7, window_bounds = array<i64: 2, 11, 4>}]} {
    %c0 = arith.constant 0 : index
    %c0_0 = arith.constant 0 : index
    %c0_1 = arith.constant 0 : index
    %0 = vector.load %arg1[%c0, %c0_0, %c0_1] : memref<2x8x32xf32, #tpu.memory_space<vmem>>, vector<2x8x32xf32>
    %1 = vector.shape_cast %0 : vector<2x8x32xf32> to vector<16x32xf32>
    %2 = arith.truncf %1 : vector<16x32xf32> to vector<16x32xbf16>
    %c0_2 = arith.constant 0 : index
    %c0_3 = arith.constant 0 : index
    %3 = vector.load %arg2[%c0_2, %c0_3] : memref<32x256xbf16, #tpu.memory_space<vmem>>, vector<32x256xbf16>
    %cst = arith.constant dense<0.000000e+00> : vector<16x256xf32>
    %4 = tpu.matmul %2, %3, %cst {dimension_numbers = #tpu.dot_dimension_numbers<[1], [0], [0], [1], [0, 0, 1, 1], [], []>} : vector<16x32xbf16>, vector<32x256xbf16>, vector<16x256xf32> -> vector<16x256xf32>
    %c0_4 = arith.constant 0 : index
    %c0_5 = arith.constant 0 : index
    %5 = vector.load %arg3[%c0_4, %c0_5] : memref<1x256xf32, #tpu.memory_space<vmem>>, vector<1x256xf32>
    %6 = vector.broadcast %5 : vector<1x256xf32> to vector<16x256xf32>
    %7 = arith.addf %4, %6 : vector<16x256xf32>
    %8 = vector.extract_strided_slice %7 {offsets = [0, 0], sizes = [16, 128], strides = [1, 1]} : vector<16x256xf32> to vector<16x128xf32>
    %9 = math.exp %8 : vector<16x128xf32>
    %cst_6 = arith.constant 1.000000e+02 : f32
    %10 = vector.broadcast %cst_6 : f32 to vector<16x128xf32>
    %11 = arith.minimumf %9, %10 : vector<16x128xf32>
    %12 = vector.extract_strided_slice %7 {offsets = [0, 128], sizes = [16, 128], strides = [1, 1]} : vector<16x256xf32> to vector<16x128xf32>
    %13 = math.cos %12 : vector<16x128xf32>
    %14 = arith.mulf %11, %13 : vector<16x128xf32>
    %15 = arith.truncf %14 : vector<16x128xf32> to vector<16x128xbf16>
    %16 = math.sin %12 : vector<16x128xf32>
    %17 = arith.mulf %11, %16 : vector<16x128xf32>
    %18 = arith.truncf %17 : vector<16x128xf32> to vector<16x128xbf16>
    %c0_7 = arith.constant 0 : index
    %c0_8 = arith.constant 0 : index
    %19 = vector.load %arg4[%c0_7, %c0_8] : memref<128x16xbf16, #tpu.memory_space<vmem>>, vector<128x16xbf16>
    %cst_9 = arith.constant dense<0.000000e+00> : vector<16x16xf32>
    %20 = tpu.matmul %15, %19, %cst_9 {dimension_numbers = #tpu.dot_dimension_numbers<[1], [0], [0], [1], [0, 0, 1, 1], [], []>} : vector<16x128xbf16>, vector<128x16xbf16>, vector<16x16xf32> -> vector<16x16xf32>
    %c0_10 = arith.constant 0 : index
    %c0_11 = arith.constant 0 : index
    %21 = vector.load %arg5[%c0_10, %c0_11] : memref<128x16xbf16, #tpu.memory_space<vmem>>, vector<128x16xbf16>
    %cst_12 = arith.constant dense<0.000000e+00> : vector<16x16xf32>
    %22 = tpu.matmul %18, %21, %cst_12 {dimension_numbers = #tpu.dot_dimension_numbers<[1], [0], [0], [1], [0, 0, 1, 1], [], []>} : vector<16x128xbf16>, vector<128x16xbf16>, vector<16x16xf32> -> vector<16x16xf32>
    %23 = arith.addf %20, %22 : vector<16x16xf32>
    %24 = vector.shape_cast %23 : vector<16x16xf32> to vector<2x8x16xf32>
    %25 = vector.extract_strided_slice %24 {offsets = [0, 0, 0], sizes = [2, 8, 4], strides = [1, 1, 1]} : vector<2x8x16xf32> to vector<2x8x4xf32>
    %c0_13 = arith.constant 0 : index
    %c0_14 = arith.constant 0 : index
    %c0_15 = arith.constant 0 : index
    %26 = vector.load %arg8[%c0_13, %c0_14, %c0_15] : memref<2x11x4xf32, #tpu.memory_space<vmem>>, vector<2x8x4xf32>
    tpu.vector_store %arg8[%c0_13, %c0_14, %c0_15], %25 {strides = array<i32>} : memref<2x11x4xf32, #tpu.memory_space<vmem>>, vector<2x8x4xf32>,
    %cst_16 = arith.constant 0.000000e+00 : f32
    %27 = vector.broadcast %cst_16 : f32 to vector<2x3x4xf32>
    %c0_17 = arith.constant 0 : index
    %c8 = arith.constant 8 : index
    %c0_18 = arith.constant 0 : index
    %28 = vector.load %arg8[%c0_17, %c8, %c0_18] : memref<2x11x4xf32, #tpu.memory_space<vmem>>, vector<2x3x4xf32>
    tpu.vector_store %arg8[%c0_17, %c8, %c0_18], %27 {strides = array<i32>} : memref<2x11x4xf32, #tpu.memory_space<vmem>>, vector<2x3x4xf32>,
    %c0_19 = arith.constant 0 : index
    %c1 = arith.constant 1 : index
    %c0_20 = arith.constant 0 : index
    %29 = vector.load %arg8[%c0_19, %c1, %c0_20] : memref<2x11x4xf32, #tpu.memory_space<vmem>>, vector<2x8x4xf32>
    %30 = vector.extract_strided_slice %24 {offsets = [0, 0, 4], sizes = [2, 8, 4], strides = [1, 1, 1]} : vector<2x8x16xf32> to vector<2x8x4xf32>
    %31 = arith.addf %29, %30 : vector<2x8x4xf32>
    %c0_21 = arith.constant 0 : index
    %c1_22 = arith.constant 1 : index
    %c0_23 = arith.constant 0 : index
    %32 = vector.load %arg8[%c0_21, %c1_22, %c0_23] : memref<2x11x4xf32, #tpu.memory_space<vmem>>, vector<2x8x4xf32>
    tpu.vector_store %arg8[%c0_21, %c1_22, %c0_23], %31 {strides = array<i32>} : memref<2x11x4xf32, #tpu.memory_space<vmem>>, vector<2x8x4xf32>,
    %c0_24 = arith.constant 0 : index
    %c2 = arith.constant 2 : index
    %c0_25 = arith.constant 0 : index
    %33 = vector.load %arg8[%c0_24, %c2, %c0_25] : memref<2x11x4xf32, #tpu.memory_space<vmem>>, vector<2x8x4xf32>
    %34 = vector.extract_strided_slice %24 {offsets = [0, 0, 8], sizes = [2, 8, 4], strides = [1, 1, 1]} : vector<2x8x16xf32> to vector<2x8x4xf32>
    %35 = arith.addf %33, %34 : vector<2x8x4xf32>
    %c0_26 = arith.constant 0 : index
    %c2_27 = arith.constant 2 : index
    %c0_28 = arith.constant 0 : index
    %36 = vector.load %arg8[%c0_26, %c2_27, %c0_28] : memref<2x11x4xf32, #tpu.memory_space<vmem>>, vector<2x8x4xf32>
    tpu.vector_store %arg8[%c0_26, %c2_27, %c0_28], %35 {strides = array<i32>} : memref<2x11x4xf32, #tpu.memory_space<vmem>>, vector<2x8x4xf32>,
    %c0_29 = arith.constant 0 : index
    %c3 = arith.constant 3 : index
    %c0_30 = arith.constant 0 : index
    %37 = vector.load %arg8[%c0_29, %c3, %c0_30] : memref<2x11x4xf32, #tpu.memory_space<vmem>>, vector<2x8x4xf32>
    %38 = vector.extract_strided_slice %24 {offsets = [0, 0, 12], sizes = [2, 8, 4], strides = [1, 1, 1]} : vector<2x8x16xf32> to vector<2x8x4xf32>
    %39 = arith.addf %37, %38 : vector<2x8x4xf32>
    %c0_31 = arith.constant 0 : index
    %c3_32 = arith.constant 3 : index
    %c0_33 = arith.constant 0 : index
    %40 = vector.load %arg8[%c0_31, %c3_32, %c0_33] : memref<2x11x4xf32, #tpu.memory_space<vmem>>, vector<2x8x4xf32>
    tpu.vector_store %arg8[%c0_31, %c3_32, %c0_33], %39 {strides = array<i32>} : memref<2x11x4xf32, #tpu.memory_space<vmem>>, vector<2x8x4xf32>,
    %c0_34 = arith.constant 0 : index
    %c0_35 = arith.constant 0 : index
    %c0_36 = arith.constant 0 : index
    %41 = vector.load %arg8[%c0_34, %c0_35, %c0_36] : memref<2x11x4xf32, #tpu.memory_space<vmem>>, vector<2x3x4xf32>
    %c0_37 = arith.constant 0 : index
    %c0_38 = arith.constant 0 : index
    %42 = vector.load %arg6[%c0_37, %c0_38] : memref<3x4xf32, #tpu.memory_space<vmem>>, vector<3x4xf32>
    %43 = vector.shape_cast %42 : vector<3x4xf32> to vector<1x3x4xf32>
    %44 = vector.broadcast %43 : vector<1x3x4xf32> to vector<2x3x4xf32>
    %45 = arith.mulf %41, %44 : vector<2x3x4xf32>
    %c0_39 = arith.constant 0 : index
    %c0_40 = arith.constant 0 : index
    %c0_41 = arith.constant 0 : index
    %46 = vector.load %arg8[%c0_39, %c0_40, %c0_41] : memref<2x11x4xf32, #tpu.memory_space<vmem>>, vector<2x3x4xf32>
    tpu.vector_store %arg8[%c0_39, %c0_40, %c0_41], %45 {strides = array<i32>} : memref<2x11x4xf32, #tpu.memory_space<vmem>>, vector<2x3x4xf32>,
    %c0_42 = arith.constant 0 : index
    %c8_43 = arith.constant 8 : index
    %c0_44 = arith.constant 0 : index
    %47 = vector.load %arg8[%c0_42, %c8_43, %c0_44] : memref<2x11x4xf32, #tpu.memory_space<vmem>>, vector<2x3x4xf32>
    %c0_45 = arith.constant 0 : index
    %c0_46 = arith.constant 0 : index
    %48 = vector.load %arg7[%c0_45, %c0_46] : memref<3x4xf32, #tpu.memory_space<vmem>>, vector<3x4xf32>
    %49 = vector.shape_cast %48 : vector<3x4xf32> to vector<1x3x4xf32>
    %50 = vector.broadcast %49 : vector<1x3x4xf32> to vector<2x3x4xf32>
    %51 = arith.mulf %47, %50 : vector<2x3x4xf32>
    %c0_47 = arith.constant 0 : index
    %c8_48 = arith.constant 8 : index
    %c0_49 = arith.constant 0 : index
    %52 = vector.load %arg8[%c0_47, %c8_48, %c0_49] : memref<2x11x4xf32, #tpu.memory_space<vmem>>, vector<2x3x4xf32>
    tpu.vector_store %arg8[%c0_47, %c8_48, %c0_49], %51 {strides = array<i32>} : memref<2x11x4xf32, #tpu.memory_space<vmem>>, vector<2x3x4xf32>,
    return
  }
  func.func @transform_0(%arg0: i32) -> (i32, i32, i32) {
    %c0_i32 = arith.constant 0 : i32
    %c0_i32_0 = arith.constant 0 : i32
    %c0_i32_1 = arith.constant 0 : i32
    return %arg0, %c0_i32, %c0_i32_0 : i32, i32, i32
  }
  func.func @transform_1(%arg0: i32) -> (i32, i32) {
    %c0_i32 = arith.constant 0 : i32
    %c0_i32_0 = arith.constant 0 : i32
    %c0_i32_1 = arith.constant 0 : i32
    return %c0_i32, %c0_i32_0 : i32, i32
  }
  func.func @transform_2(%arg0: i32) -> (i32, i32) {
    %c0_i32 = arith.constant 0 : i32
    %c0_i32_0 = arith.constant 0 : i32
    %c0_i32_1 = arith.constant 0 : i32
    return %c0_i32, %c0_i32_0 : i32, i32
  }
  func.func @transform_3(%arg0: i32) -> (i32, i32) {
    %c0_i32 = arith.constant 0 : i32
    %c0_i32_0 = arith.constant 0 : i32
    %c0_i32_1 = arith.constant 0 : i32
    return %c0_i32, %c0_i32_0 : i32, i32
  }
  func.func @transform_4(%arg0: i32) -> (i32, i32) {
    %c0_i32 = arith.constant 0 : i32
    %c0_i32_0 = arith.constant 0 : i32
    %c0_i32_1 = arith.constant 0 : i32
    return %c0_i32, %c0_i32_0 : i32, i32
  }
  func.func @transform_5(%arg0: i32) -> (i32, i32) {
    %c0_i32 = arith.constant 0 : i32
    %c0_i32_0 = arith.constant 0 : i32
    %c0_i32_1 = arith.constant 0 : i32
    return %c0_i32, %c0_i32_0 : i32, i32
  }
  func.func @transform_6(%arg0: i32) -> (i32, i32) {
    %c0_i32 = arith.constant 0 : i32
    %c0_i32_0 = arith.constant 0 : i32
    %c0_i32_1 = arith.constant 0 : i32
    return %c0_i32, %c0_i32_0 : i32, i32
  }
  func.func @transform_7(%arg0: i32) -> (i32, i32, i32) {
    %c0_i32 = arith.constant 0 : i32
    %c0_i32_0 = arith.constant 0 : i32
    %c0_i32_1 = arith.constant 0 : i32
    return %arg0, %c0_i32, %c0_i32_0 : i32, i32, i32
  }
}

module attributes {stable_mosaic.version = 11 : i64} {
  func.func @_istft_head_kernel(%arg0: i32, %arg1: memref<2x8x32xf32, #tpu.memory_space<vmem>>, %arg2: memref<32x256xbf16, #tpu.memory_space<vmem>>, %arg3: memref<1x256xf32, #tpu.memory_space<vmem>>, %arg4: memref<128x16xbf16, #tpu.memory_space<vmem>>, %arg5: memref<128x16xbf16, #tpu.memory_space<vmem>>, %arg6: memref<3x4xf32, #tpu.memory_space<vmem>>, %arg7: memref<3x4xf32, #tpu.memory_space<vmem>>, %arg8: memref<2x11x4xf32, #tpu.memory_space<vmem>>) attributes {dimension_semantics = [#tpu.dimension_semantics<parallel>], iteration_bounds = array<i64: 1>, scalar_prefetch = 0 : i64, scratch_operands = 0 : i64, tpu.core_type = #tpu.core_type<tc>, window_params = [{transform_indices = @transform_0, window_bounds = array<i64: 2, 8, 32>}, {pipeline_mode = #tpu.pipeline_mode<synchronous>, transform_indices = @transform_1, window_bounds = array<i64: 32, 256>}, {pipeline_mode = #tpu.pipeline_mode<synchronous>, transform_indices = @transform_2, window_bounds = array<i64: 1, 256>}, {pipeline_mode = #tpu.pipeline_mode<synchronous>, transform_indices = @transform_3, window_bounds = array<i64: 128, 16>}, {pipeline_mode = #tpu.pipeline_mode<synchronous>, transform_indices = @transform_4, window_bounds = array<i64: 128, 16>}, {pipeline_mode = #tpu.pipeline_mode<synchronous>, transform_indices = @transform_5, window_bounds = array<i64: 3, 4>}, {pipeline_mode = #tpu.pipeline_mode<synchronous>, transform_indices = @transform_6, window_bounds = array<i64: 3, 4>}, {transform_indices = @transform_7, window_bounds = array<i64: 2, 11, 4>}]} {
    %c0 = arith.constant 0 : index
    %c0_0 = arith.constant 0 : index
    %c0_1 = arith.constant 0 : index
    %0 = vector.load %arg1[%c0, %c0_0, %c0_1] : memref<2x8x32xf32, #tpu.memory_space<vmem>>, vector<2x8x32xf32>
    %1 = vector.shape_cast %0 : vector<2x8x32xf32> to vector<16x32xf32>
    %2 = arith.truncf %1 : vector<16x32xf32> to vector<16x32xbf16>
    %c0_2 = arith.constant 0 : index
    %c0_3 = arith.constant 0 : index
    %3 = vector.load %arg2[%c0_2, %c0_3] : memref<32x256xbf16, #tpu.memory_space<vmem>>, vector<32x256xbf16>
    %cst = arith.constant dense<0.000000e+00> : vector<16x256xf32>
    %4 = tpu.matmul %2, %3, %cst {dimension_numbers = #tpu.dot_dimension_numbers<[1], [0], [0], [1], [0, 0, 1, 1], [], []>} : vector<16x32xbf16>, vector<32x256xbf16>, vector<16x256xf32> -> vector<16x256xf32>
    %c0_4 = arith.constant 0 : index
    %c0_5 = arith.constant 0 : index
    %5 = vector.load %arg3[%c0_4, %c0_5] : memref<1x256xf32, #tpu.memory_space<vmem>>, vector<1x256xf32>
    %6 = vector.broadcast %5 : vector<1x256xf32> to vector<16x256xf32>
    %7 = arith.addf %4, %6 : vector<16x256xf32>
    %8 = vector.extract_strided_slice %7 {offsets = [0, 0], sizes = [16, 128], strides = [1, 1]} : vector<16x256xf32> to vector<16x128xf32>
    %9 = math.exp %8 : vector<16x128xf32>
    %cst_6 = arith.constant 1.000000e+02 : f32
    %10 = vector.broadcast %cst_6 : f32 to vector<16x128xf32>
    %11 = arith.minimumf %9, %10 : vector<16x128xf32>
    %12 = vector.extract_strided_slice %7 {offsets = [0, 128], sizes = [16, 128], strides = [1, 1]} : vector<16x256xf32> to vector<16x128xf32>
    %13 = math.cos %12 : vector<16x128xf32>
    %14 = arith.mulf %11, %13 : vector<16x128xf32>
    %15 = arith.truncf %14 : vector<16x128xf32> to vector<16x128xbf16>
    %16 = math.sin %12 : vector<16x128xf32>
    %17 = arith.mulf %11, %16 : vector<16x128xf32>
    %18 = arith.truncf %17 : vector<16x128xf32> to vector<16x128xbf16>
    %c0_7 = arith.constant 0 : index
    %c0_8 = arith.constant 0 : index
    %19 = vector.load %arg4[%c0_7, %c0_8] : memref<128x16xbf16, #tpu.memory_space<vmem>>, vector<128x16xbf16>
    %cst_9 = arith.constant dense<0.000000e+00> : vector<16x16xf32>
    %20 = tpu.matmul %15, %19, %cst_9 {dimension_numbers = #tpu.dot_dimension_numbers<[1], [0], [0], [1], [0, 0, 1, 1], [], []>} : vector<16x128xbf16>, vector<128x16xbf16>, vector<16x16xf32> -> vector<16x16xf32>
    %c0_10 = arith.constant 0 : index
    %c0_11 = arith.constant 0 : index
    %21 = vector.load %arg5[%c0_10, %c0_11] : memref<128x16xbf16, #tpu.memory_space<vmem>>, vector<128x16xbf16>
    %cst_12 = arith.constant dense<0.000000e+00> : vector<16x16xf32>
    %22 = tpu.matmul %18, %21, %cst_12 {dimension_numbers = #tpu.dot_dimension_numbers<[1], [0], [0], [1], [0, 0, 1, 1], [], []>} : vector<16x128xbf16>, vector<128x16xbf16>, vector<16x16xf32> -> vector<16x16xf32>
    %23 = arith.addf %20, %22 : vector<16x16xf32>
    %24 = vector.shape_cast %23 : vector<16x16xf32> to vector<2x8x16xf32>
    %25 = vector.extract_strided_slice %24 {offsets = [0, 0, 0], sizes = [2, 8, 4], strides = [1, 1, 1]} : vector<2x8x16xf32> to vector<2x8x4xf32>
    %c0_13 = arith.constant 0 : index
    %c0_14 = arith.constant 0 : index
    %c0_15 = arith.constant 0 : index
    %26 = vector.load %arg8[%c0_13, %c0_14, %c0_15] : memref<2x11x4xf32, #tpu.memory_space<vmem>>, vector<2x8x4xf32>
    tpu.vector_store %arg8[%c0_13, %c0_14, %c0_15], %25 {strides = array<i32>} : memref<2x11x4xf32, #tpu.memory_space<vmem>>, vector<2x8x4xf32>,
    %cst_16 = arith.constant 0.000000e+00 : f32
    %27 = vector.broadcast %cst_16 : f32 to vector<2x3x4xf32>
    %c0_17 = arith.constant 0 : index
    %c8 = arith.constant 8 : index
    %c0_18 = arith.constant 0 : index
    %28 = vector.load %arg8[%c0_17, %c8, %c0_18] : memref<2x11x4xf32, #tpu.memory_space<vmem>>, vector<2x3x4xf32>
    tpu.vector_store %arg8[%c0_17, %c8, %c0_18], %27 {strides = array<i32>} : memref<2x11x4xf32, #tpu.memory_space<vmem>>, vector<2x3x4xf32>,
    %c0_19 = arith.constant 0 : index
    %c1 = arith.constant 1 : index
    %c0_20 = arith.constant 0 : index
    %29 = vector.load %arg8[%c0_19, %c1, %c0_20] : memref<2x11x4xf32, #tpu.memory_space<vmem>>, vector<2x8x4xf32>
    %30 = vector.extract_strided_slice %24 {offsets = [0, 0, 4], sizes = [2, 8, 4], strides = [1, 1, 1]} : vector<2x8x16xf32> to vector<2x8x4xf32>
    %31 = arith.addf %29, %30 : vector<2x8x4xf32>
    %c0_21 = arith.constant 0 : index
    %c1_22 = arith.constant 1 : index
    %c0_23 = arith.constant 0 : index
    %32 = vector.load %arg8[%c0_21, %c1_22, %c0_23] : memref<2x11x4xf32, #tpu.memory_space<vmem>>, vector<2x8x4xf32>
    tpu.vector_store %arg8[%c0_21, %c1_22, %c0_23], %31 {strides = array<i32>} : memref<2x11x4xf32, #tpu.memory_space<vmem>>, vector<2x8x4xf32>,
    %c0_24 = arith.constant 0 : index
    %c2 = arith.constant 2 : index
    %c0_25 = arith.constant 0 : index
    %33 = vector.load %arg8[%c0_24, %c2, %c0_25] : memref<2x11x4xf32, #tpu.memory_space<vmem>>, vector<2x8x4xf32>
    %34 = vector.extract_strided_slice %24 {offsets = [0, 0, 8], sizes = [2, 8, 4], strides = [1, 1, 1]} : vector<2x8x16xf32> to vector<2x8x4xf32>
    %35 = arith.addf %33, %34 : vector<2x8x4xf32>
    %c0_26 = arith.constant 0 : index
    %c2_27 = arith.constant 2 : index
    %c0_28 = arith.constant 0 : index
    %36 = vector.load %arg8[%c0_26, %c2_27, %c0_28] : memref<2x11x4xf32, #tpu.memory_space<vmem>>, vector<2x8x4xf32>
    tpu.vector_store %arg8[%c0_26, %c2_27, %c0_28], %35 {strides = array<i32>} : memref<2x11x4xf32, #tpu.memory_space<vmem>>, vector<2x8x4xf32>,
    %c0_29 = arith.constant 0 : index
    %c3 = arith.constant 3 : index
    %c0_30 = arith.constant 0 : index
    %37 = vector.load %arg8[%c0_29, %c3, %c0_30] : memref<2x11x4xf32, #tpu.memory_space<vmem>>, vector<2x8x4xf32>
    %38 = vector.extract_strided_slice %24 {offsets = [0, 0, 12], sizes = [2, 8, 4], strides = [1, 1, 1]} : vector<2x8x16xf32> to vector<2x8x4xf32>
    %39 = arith.addf %37, %38 : vector<2x8x4xf32>
    %c0_31 = arith.constant 0 : index
    %c3_32 = arith.constant 3 : index
    %c0_33 = arith.constant 0 : index
    %40 = vector.load %arg8[%c0_31, %c3_32, %c0_33] : memref<2x11x4xf32, #tpu.memory_space<vmem>>, vector<2x8x4xf32>
    tpu.vector_store %arg8[%c0_31, %c3_32, %c0_33], %39 {strides = array<i32>} : memref<2x11x4xf32, #tpu.memory_space<vmem>>, vector<2x8x4xf32>,
    %c0_34 = arith.constant 0 : index
    %c0_35 = arith.constant 0 : index
    %c0_36 = arith.constant 0 : index
    %41 = vector.load %arg8[%c0_34, %c0_35, %c0_36] : memref<2x11x4xf32, #tpu.memory_space<vmem>>, vector<2x3x4xf32>
    %c0_37 = arith.constant 0 : index
    %c0_38 = arith.constant 0 : index
    %42 = vector.load %arg6[%c0_37, %c0_38] : memref<3x4xf32, #tpu.memory_space<vmem>>, vector<3x4xf32>
    %43 = vector.shape_cast %42 : vector<3x4xf32> to vector<1x3x4xf32>
    %44 = vector.broadcast %43 : vector<1x3x4xf32> to vector<2x3x4xf32>
    %45 = arith.mulf %41, %44 : vector<2x3x4xf32>
    %c0_39 = arith.constant 0 : index
    %c0_40 = arith.constant 0 : index
    %c0_41 = arith.constant 0 : index
    %46 = vector.load %arg8[%c0_39, %c0_40, %c0_41] : memref<2x11x4xf32, #tpu.memory_space<vmem>>, vector<2x3x4xf32>
    tpu.vector_store %arg8[%c0_39, %c0_40, %c0_41], %45 {strides = array<i32>} : memref<2x11x4xf32, #tpu.memory_space<vmem>>, vector<2x3x4xf32>,
    %c0_42 = arith.constant 0 : index
    %c8_43 = arith.constant 8 : index
    %c0_44 = arith.constant 0 : index
    %47 = vector.load %arg8[%c0_42, %c8_43, %c0_44] : memref<2x11x4xf32, #tpu.memory_space<vmem>>, vector<2x3x4xf32>
    %c0_45 = arith.constant 0 : index
    %c0_46 = arith.constant 0 : index
    %48 = vector.load %arg7[%c0_45, %c0_46] : memref<3x4xf32, #tpu.memory_space<vmem>>, vector<3x4xf32>
    %49 = vector.shape_cast %48 : vector<3x4xf32> to vector<1x3x4xf32>
    %50 = vector.broadcast %49 : vector<1x3x4xf32> to vector<2x3x4xf32>
    %51 = arith.mulf %47, %50 : vector<2x3x4xf32>
    %c0_47 = arith.constant 0 : index
    %c8_48 = arith.constant 8 : index
    %c0_49 = arith.constant 0 : index
    %52 = vector.load %arg8[%c0_47, %c8_48, %c0_49] : memref<2x11x4xf32, #tpu.memory_space<vmem>>, vector<2x3x4xf32>
    tpu.vector_store %arg8[%c0_47, %c8_48, %c0_49], %51 {strides = array<i32>} : memref<2x11x4xf32, #tpu.memory_space<vmem>>, vector<2x3x4xf32>,
    return
  }
  func.func @transform_0(%arg0: i32) -> (i32, i32, i32) {
    %c0_i32 = arith.constant 0 : i32
    %c0_i32_0 = arith.constant 0 : i32
    %c0_i32_1 = arith.constant 0 : i32
    return %arg0, %c0_i32, %c0_i32_0 : i32, i32, i32
  }
  func.func @transform_1(%arg0: i32) -> (i32, i32) {
    %c0_i32 = arith.constant 0 : i32
    %c0_i32_0 = arith.constant 0 : i32
    %c0_i32_1 = arith.constant 0 : i32
    return %c0_i32, %c0_i32_0 : i32, i32
  }
  func.func @transform_2(%arg0: i32) -> (i32, i32) {
    %c0_i32 = arith.constant 0 : i32
    %c0_i32_0 = arith.constant 0 : i32
    %c0_i32_1 = arith.constant 0 : i32
    return %c0_i32, %c0_i32_0 : i32, i32
  }
  func.func @transform_3(%arg0: i32) -> (i32, i32) {
    %c0_i32 = arith.constant 0 : i32
    %c0_i32_0 = arith.constant 0 : i32
    %c0_i32_1 = arith.constant 0 : i32
    return %c0_i32, %c0_i32_0 : i32, i32
  }
  func.func @transform_4(%arg0: i32) -> (i32, i32) {
    %c0_i32 = arith.constant 0 : i32
    %c0_i32_0 = arith.constant 0 : i32
    %c0_i32_1 = arith.constant 0 : i32
    return %c0_i32, %c0_i32_0 : i32, i32
  }
  func.func @transform_5(%arg0: i32) -> (i32, i32) {
    %c0_i32 = arith.constant 0 : i32
    %c0_i32_0 = arith.constant 0 : i32
    %c0_i32_1 = arith.constant 0 : i32
    return %c0_i32, %c0_i32_0 : i32, i32
  }
  func.func @transform_6(%arg0: i32) -> (i32, i32) {
    %c0_i32 = arith.constant 0 : i32
    %c0_i32_0 = arith.constant 0 : i32
    %c0_i32_1 = arith.constant 0 : i32
    return %c0_i32, %c0_i32_0 : i32, i32
  }
  func.func @transform_7(%arg0: i32) -> (i32, i32, i32) {
    %c0_i32 = arith.constant 0 : i32
    %c0_i32_0 = arith.constant 0 : i32
    %c0_i32_1 = arith.constant 0 : i32
    return %arg0, %c0_i32, %c0_i32_0 : i32, i32, i32
  }
}

</mosaic_0001>

<bundles_post_ra>
// kernel: tpu_custom_call.1
= control target key start
LH: loop header
LB: loop body
LE: loop exit
PB: predicated region body
PF: predicated region fallthrough
CT: control target
= control target key end

     0   :  { %v962_v1 = vmov 0   ;;  %vm66_vm0 = vcmask 261120   ;;  %v963_v9 = vmov 0.0   ;;  %vm964_vm1 = vmmov 0   ;;  %s971_s23 = smov 120   ;;  %s972_s24 = smov 124   ;;  %s1268_s1 = inlined_call_operand.vmem [shape: bf16[32,256], index: 1, kind: input, shape index: {}]   ;;  %s1269_s0 = inlined_call_operand.vmem [shape: f32[2,8,32], index: 0, kind: input, shape index: {}]   ;;  %s1270_s4 = inlined_call_operand.vmem [shape: bf16[128,16], index: 4, kind: input, shape index: {}]   ;;  %s1271_s3 = inlined_call_operand.vmem [shape: bf16[128,16], index: 3, kind: input, shape index: {}]   ;;  %s1272_s2 = inlined_call_operand.vmem [shape: f32[1,256], index: 2, kind: input, shape index: {}]   ;;  %s1273_s7 = inlined_call_operand.vmem [shape: f32[2,11,4], index: 7, kind: output, shape index: {}]   ;;  %s1274_s5 = inlined_call_operand.vmem [shape: f32[3,4], index: 5, kind: input, shape index: {}]   ;;  %s1275_s6 = inlined_call_operand.vmem [shape: f32[3,4], index: 6, kind: input, shape index: {}]  }
   0x1   :  { %v928_v0 = vld [vmem:[%s1268_s1 + $0x4] ss:$8 sps:$4 sm:$0xff]   ;;  %102 = vmatprep.mubr.bf16.mxu0 %v962_v1  ;;  %v930_v2 = vld [vmem:[%s1268_s1] ss:$8 sps:$4 sm:$0xff]   ;;  %v931_v3 = vld [vmem:[%s1268_s1 + $0x14] ss:$8 sps:$4 sm:$0xff]   ;;  %886 = vmatprep.subr.bf16.mxu1 %v963_v9  ;;  %v36_v25 = vlaneseq }
   0x2   :  { %70 = vmatprep.subr.bf16.mxu0 %v928_v0  ;;  %v933_v4 = vld [vmem:[%s1268_s1 + $0x10] ss:$8 sps:$4 sm:$0xff]   ;;  %v27_v5 = vld [vmem:[%s1269_s0] sm:$0xff]  ;;  %v28_v6 = vld [vmem:[%s1269_s0 + $0x8] sm:$0xff]  ;;  %902 = vmatprep.mubr.msk.bf16.mxu1 %vm964_vm1, %v963_v9  ;;  %v965_v54 = vmov 683565275  }
   0x3   :  { %71 = vmatpush1.bf16.msra.mxu0 %v930_v2  ;;  %v29_v7 = vpack.c.bf16 %v28_v6, %v27_v5  ;;  %v934_v8 = vld [vmem:[%s1270_s4] sm:$0xff]   ;;  %v936_v11 = vld [vmem:[%s1270_s4 + $0x8] sm:$0xff]   ;;  %v938_v13 = vld [vmem:[%s1270_s4 + $0x10] sm:$0xff]   ;;  %v1098_v26 = vshrl.u32 %v36_v25, 7  ;;  %v966_v56 = vmov 2475754826  }
   0x4   :  { %72 = vmatprep.subr.bf16.mxu0 %v931_v3  ;;  %v935_v10 = vld [vmem:[%s1271_s3] sm:$0xff]   ;;  %v937_v12 = vld [vmem:[%s1271_s3 + $0x8] sm:$0xff]   ;;  %v939_v14 = vld [vmem:[%s1271_s3 + $0x10] sm:$0xff]   ;;  %v967_v58 = vmov 2131351028   ;;  %s973_s27 = smov 116  }
   0x5   :  { %887 = vmatpush3.bf16.msra.mxu1 %v935_v10  ;;  %v940_v15 = vld [vmem:[%s1270_s4 + $0x18] sm:$0xff]   ;;  %v942_v17 = vld [vmem:[%s1270_s4 + $0x20] sm:$0xff]   ;;  %v944_v19 = vld [vmem:[%s1270_s4 + $0x28] sm:$0xff]   ;;  %v42_v27 = vsub.s32 1, %v1098_v26  ;;  %v968_v60 = vmov 2102212464  }
   0x6   :  { %888 = vmatprep.subr.bf16.mxu1 %v963_v9  ;;  %v941_v16 = vld [vmem:[%s1271_s3 + $0x18] sm:$0xff]   ;;  %v943_v18 = vld [vmem:[%s1271_s3 + $0x20] sm:$0xff]   ;;  %v945_v20 = vld [vmem:[%s1271_s3 + $0x28] sm:$0xff]   ;;  %v969_v1 = vmov 920167782  }
   0x7   :  { %73 = vmatpush1.bf16.msra.mxu0 %v933_v4  ;;  %v946_v21 = vld [vmem:[%s1270_s4 + $0x30] sm:$0xff]   ;;  %v948_v23 = vld [vmem:[%s1270_s4 + $0x38] sm:$0xff]   ;;  %v1104_v28 = vld [vmem:[%s1272_s2] sm:$0x3]  ;;  %v970_v5 = vmov 1326507024  }
   0x8   :  { %866 = vmatprep.subr.bf16.mxu0 %v963_v9  ;;  %v947_v22 = vld [vmem:[%s1271_s3 + $0x30] sm:$0xff]   ;;  %v949_v24 = vld [vmem:[%s1271_s3 + $0x38] sm:$0xff]   ;;  %v43_v29 = vrot.slane %v1104_v28, %v42_v27 }
   0x9   :  { %889 = vmatpush3.bf16.msra.mxu1 %v937_v12 }
   0xa   :  { %815 = vmatmul.mubr.msk.bf16.vlgmr.msra.gmra.mrb[0].mxu0 %vm66_vm0, %v29_v7  ;;  %890 = vmatprep.subr.bf16.mxu1 %v963_v9 }
   0xb   :  { %867 = vmatpush3.bf16.msra.mxu0 %v934_v8  ;;  %882 = vmatprep.mubr.msk.bf16.mxu0 %vm964_vm1, %v963_v9 }
   0xc   :  { %868 = vmatprep.subr.bf16.mxu0 %v963_v9 }
   0xd   :  { %891 = vmatpush3.bf16.msra.mxu1 %v939_v14 }
   0xe   :  { %892 = vmatprep.subr.bf16.mxu1 %v963_v9 }
   0xf   :  { %869 = vmatpush3.bf16.msra.mxu0 %v936_v11 }
  0x10   :  { %870 = vmatprep.subr.bf16.mxu0 %v963_v9 }
  0x11   :  { %893 = vmatpush3.bf16.msra.mxu1 %v941_v16 }
  0x12   :  { %894 = vmatprep.subr.bf16.mxu1 %v963_v9 }
  0x13   :  { %871 = vmatpush3.bf16.msra.mxu0 %v938_v13 }
  0x14   :  { %872 = vmatprep.subr.bf16.mxu0 %v963_v9 }
  0x15   :  { %895 = vmatpush3.bf16.msra.mxu1 %v943_v18 }
  0x16   :  { %896 = vmatprep.subr.bf16.mxu1 %v963_v9 }
  0x17   :  { %873 = vmatpush3.bf16.msra.mxu0 %v940_v15 }
  0x18   :  { %874 = vmatprep.subr.bf16.mxu0 %v963_v9 }
  0x19   :  { %897 = vmatpush3.bf16.msra.mxu1 %v945_v20 }
  0x1a   :  { %898 = vmatprep.subr.bf16.mxu1 %v963_v9 }
  0x1b   :  { %875 = vmatpush3.bf16.msra.mxu0 %v942_v17 }
  0x1c   :  { %876 = vmatprep.subr.bf16.mxu0 %v963_v9 }
  0x1d   :  { %899 = vmatpush3.bf16.msra.mxu1 %v947_v22 }
  0x1e   :  { %900 = vmatprep.subr.bf16.mxu1 %v963_v9 }
  0x1f   :  { %877 = vmatpush3.bf16.msra.mxu0 %v944_v19 }
  0x20   :  { %878 = vmatprep.subr.bf16.mxu0 %v963_v9 }
  0x21   :  { %901 = vmatpush3.bf16.msra.mxu1 %v949_v24 }
  0x23   :  { %879 = vmatpush3.bf16.msra.mxu0 %v946_v21 }
  0x24   :  { %880 = vmatprep.subr.bf16.mxu0 %v963_v9 }
  0x27   :  { %881 = vmatpush3.bf16.msra.mxu0 %v948_v23 }
  0xdd   :  { %v1107_v30 = vpop.f32.mrb[0].mxu0 }
  0xde   :  { %v106_v31 = vpop.f32.mrb[1].mxu0 }
  0xdf   :  { %v1109_v32 = vadd.f32 %v106_v31, %v43_v29  ;;  %v1111_v33 = vpop.f32.mrb[2].mxu0 }
  0xe0   :  { %v110_v34 = vpop.f32.mrb[3].mxu0 }
  0xe1   :  { %v119_v35 = vand.u32 2147483647, %v1109_v32  ;;  %v122_v36 = vand.u32 2139095040, %v1109_v32  ;;  %v1115_v37 = vadd.f32 %v110_v34, %v43_v29  ;;  %vm121_vm0 = vcmp.lt.s32.totalorder %v1109_v32, 0 }
  0xe3   :  { %v123_v38 = vshrl.u32 %v122_v36, 23  ;;  %v225_v39 = vand.u32 2139095040, %v1115_v37  ;;  %v126_v41 = vand.u32 8388607, %v119_v35  ;;  %v222_v46 = vand.u32 2147483647, %v1115_v37 }
  0xe4   :  { %vm120_vm1 = vcmp.le.f32.partialorder %v119_v35, 0.7853982 }
  0xe5   :  { %v816_v40 = vadd.s32 4294967169, %v123_v38  ;;  %v226_v42 = vshrl.u32 %v225_v39, 23  ;;  %v127_v45 = vor.u32 8388608, %v126_v41  ;;  %v229_v53 = vand.u32 8388607, %v222_v46 }
  0xe7   :  { %v129_v43 = vadd.s32 1, %v816_v40  ;;  %v820_v44 = vadd.s32 4294967169, %v226_v42  ;;  %v1121_v52 = vshll.u32 %v127_v45, 8  ;;  %v230_v21 = vor.u32 8388608, %v229_v53 }
  0xe9   :  { %vm130_vm2 = vcmp.gt.s32.totalorder %v129_v43, 0  ;;  %v232_v48 = vadd.s32 1, %v820_v44  ;;  %v270_v41 = vshll.u32 %v230_v21, 8 }
  0xea   :  { %v131_v47 = vsel %vm130_vm2, %v129_v43, 0  ;;  %vm224_vm2 = vcmp.lt.s32.totalorder %v1115_v37, 0 }
  0xeb   :  { %v133_v49 = vand.u32 31, %v131_v47  ;;  %v132_v50 = vshrl.u32 %v131_v47, 5  ;;  %vm233_vm3 = vcmp.gt.s32.totalorder %v232_v48, 0 }
  0xec   :  { %v234_v13 = vsel %vm233_vm3, %v232_v48, 0  ;;  %vm223_vm3 = vcmp.le.f32.partialorder %v222_v46, 0.7853982 }
  0xed   :  { %v134_v51 = vsub.s32 32, %v133_v49  ;;  %v136_v55 = vshll.u32 %v965_v54, %v133_v49  ;;  %v139_v57 = vshll.u32 %v966_v56, %v133_v49  ;;  %v142_v59 = vshll.u32 %v967_v58, %v133_v49 }
  0xee   :  { %v145_v61 = vshll.u32 %v968_v60, %v133_v49  ;;  %v148_v2 = vshll.u32 %v969_v1, %v133_v49  ;;  %vm151_vm4 = vcmp.lt.s32.totalorder %v132_v50, 1  ;;  %vm153_vm5 = vcmp.lt.s32.totalorder %v132_v50, 3 }
  0xef   :  { %v137_v62 = vshrl.u32 %v966_v56, %v134_v51  ;;  %v140_v63 = vshrl.u32 %v967_v58, %v134_v51  ;;  %v143_v0 = vshrl.u32 %v968_v60, %v134_v51  ;;  %v135_v3 = vshrl.u32 %v965_v54, %v134_v51 }
  0xf0   :  { %v146_v4 = vshrl.u32 %v969_v1, %v134_v51  ;;  %v149_v6 = vshrl.u32 %v970_v5, %v134_v51  ;;  %vm154_vm6 = vcmp.lt.s32.totalorder %v132_v50, 4  ;;  %vm152_vm7 = vcmp.lt.s32.totalorder %v132_v50, 2 }
  0xf1   :  { %v138_v7 = vor.u32 %v137_v62, %v136_v55  ;;  %v141_v8 = vor.u32 %v140_v63, %v139_v57  ;;  %v144_v10 = vor.u32 %v143_v0, %v142_v59  ;;  %v236_v24 = vand.u32 31, %v234_v13 }
  0xf2   :  { %v147_v11 = vor.u32 %v146_v4, %v145_v61  ;;  %v150_v12 = vor.u32 %v149_v6, %v148_v2  ;;  %v235_v39 = vshrl.u32 %v234_v13, 5 }
  0xf3   :  { %v155_v14 = vsel %vm151_vm4, %v135_v3, %v138_v7  ;;  %v156_v15 = vsel %vm154_vm6, %v144_v10, 2102212464  ;;  %v159_v16 = vsel %vm151_vm4, %v138_v7, %v141_v8  ;;  %v163_v17 = vsel %vm151_vm4, %v141_v8, %v144_v10 }
  0xf4   :  { %v157_v18 = vsel %vm153_vm5, %v141_v8, %v156_v15  ;;  %v160_v19 = vsel %vm154_vm6, %v147_v11, 920167782  ;;  %v164_v20 = vsel %vm154_vm6, %v150_v12, 1326507024  ;;  %v237_v40 = vsub.s32 32, %v236_v24 }
  0xf5   :  { %v161_v22 = vsel %vm153_vm5, %v144_v10, %v160_v19  ;;  %v165_v23 = vsel %vm153_vm5, %v147_v11, %v164_v20  ;;  %v158_v25 = vsel %vm152_vm7, %v155_v14, %v157_v18  ;;  %v239_v43 = vshll.u32 %v965_v54, %v236_v24 }
  0xf6   :  { %v162_v27 = vsel %vm152_vm7, %v159_v16, %v161_v22  ;;  %v166_v29 = vsel %vm152_vm7, %v163_v17, %v165_v23  ;;  %v174_v42 = vmul.u32 %v1121_v52, %v158_v25  ;;  %v242_v44 = vshll.u32 %v966_v56, %v236_v24 }
  0xf7   :  { %v1129_v31 = vmul.u32.u64.low %v1121_v52, %v166_v29  ;;  %v1130_v34 = vmul.u32.u64.high %v1121_v52, %v166_v29, %v1129_v31  ;;  %v1133_v36 = vmul.u32.u64.low %v1121_v52, %v162_v27  ;;  %v1134_v38 = vmul.u32.u64.high %v1121_v52, %v162_v27, %v1133_v36 }
  0xf8   :  { %v245_v45 = vshll.u32 %v967_v58, %v236_v24  ;;  %v240_v47 = vshrl.u32 %v966_v56, %v237_v40  ;;  %v243_v48 = vshrl.u32 %v967_v58, %v237_v40  ;;  %v246_v49 = vshrl.u32 %v968_v60, %v237_v40 }
  0xf9   :  { %v248_v50 = vshll.u32 %v968_v60, %v236_v24  ;;  %vm176_vm8 = vc.u32 %v1130_v34, %v1133_v36  ;;  %v177_v51 = vadd.s32 1, %v1134_v38  ;;  %v249_v53 = vshrl.u32 %v969_v1, %v237_v40 }
  0xfa   :  { %v251_v55 = vshll.u32 %v969_v1, %v236_v24  ;;  %v241_v57 = vor.u32 %v240_v47, %v239_v43  ;;  %v244_v59 = vor.u32 %v243_v48, %v242_v44  ;;  %v247_v61 = vor.u32 %v246_v49, %v245_v45 }
  0xfb   :  { %v252_v62 = vshrl.u32 %v970_v5, %v237_v40  ;;  %v178_v52 = vsel %vm176_vm8, %v177_v51, %v1134_v38  ;;  %v250_v63 = vor.u32 %v249_v53, %v248_v50  ;;  %vm254_vm9 = vcmp.lt.s32.totalorder %v235_v39, 1 }
  0xfc   :  { %vm257_vm10 = vcmp.lt.s32.totalorder %v235_v39, 4  ;;  %v179_v56 = vadd.s32 %v178_v52, %v174_v42  ;;  %vm256_vm11 = vcmp.lt.s32.totalorder %v235_v39, 3  ;;  %v238_v0 = vshrl.u32 %v965_v54, %v237_v40 }
  0xfd   :  { %v253_v58 = vor.u32 %v252_v62, %v251_v55  ;;  %v259_v60 = vsel %vm257_vm10, %v247_v61, 2102212464  ;;  %v262_v2 = vsel %vm254_vm9, %v241_v57, %v244_v59  ;;  %v263_v3 = vsel %vm257_vm10, %v250_v63, 920167782 }
  0xfe   :  { %v266_v4 = vsel %vm254_vm9, %v244_v59, %v247_v61  ;;  %v180_v6 = vadd.s32 536870912, %v179_v56  ;;  %vm255_vm12 = vcmp.lt.s32.totalorder %v235_v39, 2  ;;  %v264_v1 = vsel %vm256_vm11, %v247_v61, %v263_v3 }
  0xff   :  { %v267_v7 = vsel %vm257_vm10, %v253_v58, 1326507024  ;;  %v258_v8 = vsel %vm254_vm9, %v238_v0, %v241_v57  ;;  %v260_v5 = vsel %vm256_vm11, %v244_v59, %v259_v60  ;;  %v265_v10 = vsel %vm255_vm12, %v262_v2, %v264_v1 }
 0x100   :  { %v268_v11 = vsel %vm256_vm11, %v250_v63, %v267_v7  ;;  %v181_v12 = vshrl.u32 %v180_v6, 30  ;;  %v1144_v14 = vmul.u32.u64.low %v270_v41, %v265_v10  ;;  %v1145_v15 = vmul.u32.u64.high %v270_v41, %v265_v10, %v1144_v14 }
 0x101   :  { %v269_v13 = vsel %vm255_vm12, %v266_v4, %v268_v11  ;;  %v261_v18 = vsel %vm255_vm12, %v258_v8, %v260_v5  ;;  %v175_v43 = vadd.s32 %v1133_v36, %v1130_v34  ;;  %v38_v47 = vsub.s32 0, %v1098_v26 }
 0x102   :  { %v1147_v16 = vmul.u32.u64.low %v270_v41, %v269_v13  ;;  %v1148_v17 = vmul.u32.u64.high %v270_v41, %v269_v13, %v1147_v16  ;;  %v182_v54 = vshll.u32 %v181_v12, 30  ;;  %v280_v20 = vadd.s32 1, %v1145_v15 }
 0x103   :  { %v277_v21 = vmul.u32 %v270_v41, %v261_v18  ;;  %v39_v59 = vrot.slane %v1104_v28, %v38_v47  ;;  %vm211_vm4 = vweird.f32 %v1109_v32 }
 0x104   :  { %v183_v19 = vsub.s32 %v179_v56, %v182_v54  ;;  %vm279_vm13 = vc.u32 %v1148_v17, %v1144_v14  ;;  %v205_v56 = vsub.s32 4, %v181_v12  ;;  %v278_v26 = vadd.s32 %v1144_v14, %v1148_v17 }
 0x105   :  { %v281_v23 = vsel %vm279_vm13, %v280_v20, %v1145_v15  ;;  %v105_v34 = vadd.f32 %v1107_v30, %v39_v59  ;;  %v109_v13 = vadd.f32 %v1111_v33, %v39_v59 }
 0x106   :  { %v185_v22 = vsub.s32 0, %v183_v19  ;;  %v282_v24 = vadd.s32 %v281_v23, %v277_v21  ;;  %v206_v7 = vsel %vm121_vm0, %v205_v56, %v181_v12 }
 0x107   :  { %v113_v6 = vmul.f32 1.442695, %v105_v34  ;;  %v208_v10 = vsel %vm120_vm1, 0, %v206_v7  ;;  %v115_v18 = vmul.f32 1.442695, %v109_v13 }
 0x108   :  { %v817_v25 = vmin.u32 %v185_v22, %v183_v19  ;;  %v283_v27 = vadd.s32 536870912, %v282_v24  ;;  %v421_v16 = vadd.s32 3, %v208_v10 }
 0x10a   :  { %v187_v29 = vclz %v817_v25  ;;  %v284_v31 = vshrl.u32 %v283_v27, 30  ;;  %v422_v12 = vand.u32 3, %v421_v16 }
 0x10c   :  { %v818_v38 = vadd.s32 4294967294, %v187_v29  ;;  %v285_v39 = vshll.u32 %v284_v31, 30  ;;  %v308_v54 = vsub.s32 4, %v284_v31  ;;  %vm427_vm6 = vcmp.eq.s32.totalorder %v422_v12, 2 }
 0x10d   :  { %vm424_vm7 = vcmp.eq.s32.totalorder %v422_v12, 0  ;;  %vm423_vm9 = vcmp.lt.s32.totalorder %v422_v12, 2  ;;  %v795_v12 = vld [vmem:[%s1274_s5] sm:$0x7] }
 0x10e   :  { %vm819_vm14 = vcmp.lt.s32.totalorder %v818_v38, 0  ;;  %v286_v42 = vsub.s32 %v282_v24, %v285_v39  ;;  %v309_v21 = vsel %vm224_vm2, %v308_v54, %v284_v31 }
 0x10f   :  { %v190_v40 = vsel %vm819_vm14, 0, %v818_v38  ;;  %v311_v27 = vsel %vm223_vm3, 0, %v309_v21 }
 0x110   :  { %v191_v44 = vsub.s32 32, %v190_v40  ;;  %v195_v41 = vsub.s32 4294967266, %v190_v40  ;;  %v288_v45 = vsub.s32 0, %v286_v42  ;;  %v192_v48 = vshll.u32 %v183_v19, %v190_v40 }
 0x111   :  { %v212_v19 = vand.u32 3, %v208_v10 }
 0x112   :  { %v193_v49 = vshrl.u32 %v175_v43, %v191_v44  ;;  %v196_v50 = vadd.s32 127, %v195_v41  ;;  %v821_v51 = vmin.u32 %v288_v45, %v286_v42 }
 0x113   :  { %vm217_vm5 = vcmp.eq.s32.totalorder %v212_v19, 2  ;;  %vm214_vm8 = vcmp.eq.s32.totalorder %v212_v19, 0  ;;  %vm213_vm10 = vcmp.lt.s32.totalorder %v212_v19, 2 }
 0x114   :  { %v194_v53 = vor.u32 %v193_v49, %v192_v48  ;;  %v197_v55 = vshll.u32 %v196_v50, 23  ;;  %v290_v57 = vclz %v821_v51  ;;  %v315_v50 = vand.u32 3, %v311_v27 }
 0x116   :  { %v198_v61 = vor.u32 4788187, %v197_v55  ;;  %v822_v62 = vadd.s32 4294967294, %v290_v57  ;;  %v201_v63 = vcvt.s32.f32 %v194_v53  ;;  %vm320_vm12 = vcmp.eq.s32.totalorder %v315_v50, 2 }
 0x117   :  { %vm317_vm14 = vcmp.eq.s32.totalorder %v315_v50, 0 }
 0x118   :  { %v199_v52 = vand.u32 2147483647, %v198_v61  ;;  %vm823_vm15 = vcmp.lt.s32.totalorder %v822_v62, 0 }
 0x119   :  { %v293_v58 = vsel %vm823_vm15, 0, %v822_v62 }
 0x11a   :  { %v202_v36 = vmul.f32 %v201_v63, %v199_v52  ;;  %v294_v60 = vsub.s32 32, %v293_v58  ;;  %v298_v0 = vsub.s32 4294967266, %v293_v58  ;;  %v295_v3 = vshll.u32 %v286_v42, %v293_v58 }
 0x11b   :  { %v525_v42 = vadd.s32 3, %v311_v27 }
 0x11c   :  { %v203_v2 = vxor.u32 2147483648, %v202_v36  ;;  %v296_v4 = vshrl.u32 %v278_v26, %v294_v60  ;;  %v299_v28 = vadd.s32 127, %v298_v0 }
 0x11d   :  { %v526_v49 = vand.u32 3, %v525_v42 }
 0x11e   :  { %v204_v1 = vsel %vm121_vm0, %v203_v2, %v202_v36  ;;  %v297_v8 = vor.u32 %v296_v4, %v295_v3  ;;  %v300_v5 = vshll.u32 %v299_v28, 23  ;;  %vm316_vm0 = vcmp.lt.s32.totalorder %v315_v50, 2 }
 0x11f   :  { %v207_v30 = vsel %vm120_vm1, %v1109_v32, %v204_v1  ;;  %vm531_vm11 = vcmp.eq.s32.totalorder %v526_v49, 2  ;;  %vm528_vm13 = vcmp.eq.s32.totalorder %v526_v49, 0  ;;  %vm527_vm15 = vcmp.lt.s32.totalorder %v526_v49, 2 }
 0x120   :  { %950 = vcosq.f32 %v207_v30  ;;  %v301_v11 = vor.u32 4788187, %v300_v5  ;;  %v304_v15 = vcvt.s32.f32 %v297_v8  ;;  %vm314_vm1 = vweird.f32 %v1115_v37 }
 0x121   :  { %952 = vsinq.f32 %v207_v30 }
 0x122   :  { %954 = vpow2.f32 %v113_v6  ;;  %v302_v14 = vand.u32 2147483647, %v301_v11 }
 0x123   :  { %956 = vpow2.f32 %v115_v18 }
 0x124   :  { %v305_v17 = vmul.f32 %v304_v15, %v302_v14 }
 0x126   :  { %v306_v35 = vxor.u32 2147483648, %v305_v17 }
 0x128   :  { %v307_v20 = vsel %vm224_vm2, %v306_v35, %v305_v17  ;;  %vm752_vm2 = vcmask 26624  }
 0x129   :  { %v310_v33 = vsel %vm223_vm3, %v1115_v37, %v307_v20  ;;  %753 = vst.msk [vmem:[%s1273_s7 + $0x8] sm:$0x7] %vm752_vm2, %v963_v9  ;;  %754 = vst.msk [vmem:[%s1273_s7 + $0x18] sm:$0x7] %vm752_vm2, %v963_v9  ;;  %vm749_vm3 = vcmask 31744  }
 0x12a   :  { %v951_v22 = vpop.eup %950  ;;  %958 = vcosq.f32 %v310_v33 }
 0x12b   :  { %v953_v23 = vpop.eup %952  ;;  %v218_v24 = vxor.u32 2147483648, %v951_v22  ;;  %960 = vsinq.f32 %v310_v33 }
 0x12c   :  { %v955_v25 = vpop.eup %954  ;;  %v215_v29 = vxor.u32 2147483648, %v953_v23 }
 0x12d   :  { %v429_v38 = vsel %vm427_vm6, %v218_v24, %v953_v23  ;;  %v219_v46 = vsel %vm217_vm5, %v218_v24, %v953_v23  ;;  %v117_v40 = vmin.f32 %v955_v25, 100.0  ;;  %v957_v51 = vpop.eup %956 }
 0x12e   :  { %v426_v31 = vsel %vm424_vm7, %v951_v22, %v215_v29  ;;  %v216_v39 = vsel %vm214_vm8, %v951_v22, %v215_v29  ;;  %v118_v63 = vmin.f32 %v957_v51, 100.0 }
 0x12f   :  { %v430_v43 = vsel %vm423_vm9, %v426_v31, %v429_v38  ;;  %v220_v44 = vsel %vm213_vm10, %v216_v39, %v219_v46  ;;  %v802_v46 = vld [vmem:[%s1275_s6] sm:$0x7] }
 0x130   :  { %v431_v41 = vsel %vm211_vm4, nan, %v430_v43  ;;  %v221_v45 = vsel %vm211_vm4, nan, %v220_v44 }
 0x131   :  { %v536_v47 = vmul.f32 %v431_v41, %v117_v40  ;;  %v325_v48 = vmul.f32 %v221_v45, %v117_v40 }
 0x134   :  { %v959_v53 = vpop.eup %958 }
 0x135   :  { %v961_v55 = vpop.eup %960  ;;  %v321_v57 = vxor.u32 2147483648, %v959_v53 }
 0x136   :  { %v318_v59 = vxor.u32 2147483648, %v961_v55 }
 0x137   :  { %v533_v61 = vsel %vm531_vm11, %v321_v57, %v961_v55  ;;  %v322_v62 = vsel %vm320_vm12, %v321_v57, %v961_v55 }
 0x138   :  { %v530_v52 = vsel %vm528_vm13, %v959_v53, %v318_v59  ;;  %v319_v32 = vsel %vm317_vm14, %v959_v53, %v318_v59 }
 0x139   :  { %v534_v34 = vsel %vm527_vm15, %v530_v52, %v533_v61  ;;  %v323_v36 = vsel %vm316_vm0, %v319_v32, %v322_v62 }
 0x13a   :  { %v535_v56 = vsel %vm314_vm1, nan, %v534_v34  ;;  %v324_v58 = vsel %vm314_vm1, nan, %v323_v36 }
 0x13b   :  { %v537_v26 = vmul.f32 %v535_v56, %v118_v63  ;;  %v326_v60 = vmul.f32 %v324_v58, %v118_v63 }
 0x13d   :  { %v538_v0 = vpack.c.bf16 %v537_v26, %v536_v47  ;;  %v327_v2 = vpack.c.bf16 %v326_v60, %v325_v48 }
 0x13f   :  { %883 = vmatmul.mubr.bf16.vlgmr.msra.gmra.mrb[4].mxu0 %v538_v0  ;;  %903 = vmatmul.mubr.bf16.vlgmr.msra.gmra.mrb[0].mxu1 %v327_v2 }
 0x212   :  { %v653_v37 = vpop.f32.mrb[4].mxu0  ;;  %v742_v3 = vpop.f32.mrb[0].mxu1 }
 0x213   :  { %v743_v4 = vadd.f32 %v742_v3, %v653_v37  ;;  %v884_v28 = vpop.f32.mrb[5].mxu0  ;;  %v904_v6 = vpop.f32.mrb[1].mxu1 }
 0x214   :  { %v656_v1 = vpop.f32.mrb[6].mxu0  ;;  %v745_v7 = vpop.f32.mrb[2].mxu1 }
 0x215   :  { %750 = vst.msk [vmem:[%s1273_s7] sm:$0xff] %vm749_vm3, %v743_v4  ;;  %v746_v30 = vadd.f32 %v745_v7, %v656_v1  ;;  %v885_v8 = vpop.f32.mrb[7].mxu0  ;;  %771 = vrot.lane.b32.xlu1 %v743_v4, %s971_s23  ;;  %759 = vrot.lane.b32.xlu0 %v743_v4, %s972_s24  ;;  %v905_v9 = vpop.f32.mrb[3].mxu1 }
 0x217   :  { %751 = vst.msk [vmem:[%s1273_s7 + $0x10] sm:$0xff] %vm749_vm3, %v746_v30 }
 0x219   :  { %773 = vrot.lane.b32.xlu1 %v746_v30, %s971_s23  ;;  %761 = vrot.lane.b32.xlu0 %v746_v30, %s972_s24 }
 0x21c   :  { %v755_v10 = vld [vmem:[%s1273_s7 + $0x1] sm:$0xff] }
 0x21d   :  { %785 = vrot.lane.b32.xlu1 %v746_v30, %s973_s27  ;;  %783 = vrot.lane.b32.xlu0 %v743_v4, %s973_s27 }
 0x21e   :  { %v756_v14 = vld [vmem:[%s1273_s7 + $0x11] sm:$0xff] }
 0x287   :  { %v760_v5 = vpop.permute.xlu0 %759  ;;  %v772_v16 = vpop.permute.xlu1 %771 }
 0x288   :  { %v765_v11 = vadd.f32 %v760_v5, %v755_v10 }
 0x28a   :  { %767 = vst.msk [vmem:[%s1273_s7 + $0x1] sm:$0xff] %vm749_vm3, %v765_v11 }
 0x28b   :  { %v762_v13 = vpop.permute.xlu0 %761  ;;  %v774_v18 = vpop.permute.xlu1 %773 }
 0x28c   :  { %v766_v15 = vadd.f32 %v762_v13, %v756_v14 }
 0x28e   :  { %768 = vst.msk [vmem:[%s1273_s7 + $0x11] sm:$0xff] %vm749_vm3, %v766_v15 }
 0x28f   :  { %v784_v22 = vpop.permute.xlu0 %783  ;;  %v786_v24 = vpop.permute.xlu1 %785 }
 0x291   :  { %v769_v17 = vld [vmem:[%s1273_s7 + $0x2] sm:$0xff] }
 0x292   :  { %v777_v54 = vadd.f32 %v772_v16, %v769_v17 }
 0x294   :  { %779 = vst.msk [vmem:[%s1273_s7 + $0x2] sm:$0xff] %vm749_vm3, %v777_v54 }
 0x295   :  { %v770_v35 = vld [vmem:[%s1273_s7 + $0x12] sm:$0xff] }
 0x296   :  { %v778_v19 = vadd.f32 %v774_v18, %v770_v35 }
 0x298   :  { %780 = vst.msk [vmem:[%s1273_s7 + $0x12] sm:$0xff] %vm749_vm3, %v778_v19 }
 0x29b   :  { %v781_v20 = vld [vmem:[%s1273_s7 + $0x3] sm:$0xff]  ;;  %v793_v21 = vld [vmem:[%s1273_s7] sm:$0x7] }
 0x29c   :  { %v796_v33 = vmul.f32 %v795_v12, %v793_v21  ;;  %v789_v23 = vadd.f32 %v784_v22, %v781_v20 }
 0x29e   :  { %798 = vst.msk [vmem:[%s1273_s7] sm:$0x7] %vm752_vm2, %v796_v33 }
 0x29f   :  { %791 = vst.msk [vmem:[%s1273_s7 + $0x3] sm:$0xff] %vm749_vm3, %v789_v23  ;;  %v782_v25 = vld [vmem:[%s1273_s7 + $0x13] sm:$0xff]  ;;  %v794_v27 = vld [vmem:[%s1273_s7 + $0x10] sm:$0x7] }
 0x2a0   :  { %v790_v29 = vadd.f32 %v786_v24, %v782_v25  ;;  %v797_v38 = vmul.f32 %v795_v12, %v794_v27 }
 0x2a2   :  { %792 = vst.msk [vmem:[%s1273_s7 + $0x13] sm:$0xff] %vm749_vm3, %v790_v29 }
 0x2a3   :  { %799 = vst.msk [vmem:[%s1273_s7 + $0x10] sm:$0x7] %vm752_vm2, %v797_v38 }
 0x2a6   :  { %v800_v31 = vld [vmem:[%s1273_s7 + $0x8] sm:$0x7] }
 0x2a7   :  { %v803_v39 = vmul.f32 %v802_v46, %v800_v31 }
 0x2a9   :  { %805 = vst.msk [vmem:[%s1273_s7 + $0x8] sm:$0x7] %vm752_vm2, %v803_v39  ;;  %v801_v40 = vld [vmem:[%s1273_s7 + $0x18] sm:$0x7] }
 0x2aa   :  { %v804_v42 = vmul.f32 %v802_v46, %v801_v40 }
 0x2ac   :  { %806 = vst.msk [vmem:[%s1273_s7 + $0x18] sm:$0x7] %vm752_vm2, %v804_v42 }

// kernel: tpu_custom_call.1
= control target key start
LH: loop header
LB: loop body
LE: loop exit
PB: predicated region body
PF: predicated region fallthrough
CT: control target
= control target key end

     0   :  { %v962_v1 = vmov 0   ;;  %vm66_vm0 = vcmask 261120   ;;  %v963_v9 = vmov 0.0   ;;  %vm964_vm1 = vmmov 0   ;;  %s971_s23 = smov 120   ;;  %s972_s24 = smov 124   ;;  %s1268_s1 = inlined_call_operand.vmem [shape: bf16[32,256], index: 1, kind: input, shape index: {}]   ;;  %s1269_s0 = inlined_call_operand.vmem [shape: f32[2,8,32], index: 0, kind: input, shape index: {}]   ;;  %s1270_s4 = inlined_call_operand.vmem [shape: bf16[128,16], index: 4, kind: input, shape index: {}]   ;;  %s1271_s3 = inlined_call_operand.vmem [shape: bf16[128,16], index: 3, kind: input, shape index: {}]   ;;  %s1272_s2 = inlined_call_operand.vmem [shape: f32[1,256], index: 2, kind: input, shape index: {}]   ;;  %s1273_s7 = inlined_call_operand.vmem [shape: f32[2,11,4], index: 7, kind: output, shape index: {}]   ;;  %s1274_s5 = inlined_call_operand.vmem [shape: f32[3,4], index: 5, kind: input, shape index: {}]   ;;  %s1275_s6 = inlined_call_operand.vmem [shape: f32[3,4], index: 6, kind: input, shape index: {}]  }
   0x1   :  { %v928_v0 = vld [vmem:[%s1268_s1 + $0x4] ss:$8 sps:$4 sm:$0xff]   ;;  %102 = vmatprep.mubr.bf16.mxu0 %v962_v1  ;;  %v930_v2 = vld [vmem:[%s1268_s1] ss:$8 sps:$4 sm:$0xff]   ;;  %v931_v3 = vld [vmem:[%s1268_s1 + $0x14] ss:$8 sps:$4 sm:$0xff]   ;;  %886 = vmatprep.subr.bf16.mxu1 %v963_v9  ;;  %v36_v25 = vlaneseq }
   0x2   :  { %70 = vmatprep.subr.bf16.mxu0 %v928_v0  ;;  %v933_v4 = vld [vmem:[%s1268_s1 + $0x10] ss:$8 sps:$4 sm:$0xff]   ;;  %v27_v5 = vld [vmem:[%s1269_s0] sm:$0xff]  ;;  %v28_v6 = vld [vmem:[%s1269_s0 + $0x8] sm:$0xff]  ;;  %902 = vmatprep.mubr.msk.bf16.mxu1 %vm964_vm1, %v963_v9  ;;  %v965_v54 = vmov 683565275  }
   0x3   :  { %71 = vmatpush1.bf16.msra.mxu0 %v930_v2  ;;  %v29_v7 = vpack.c.bf16 %v28_v6, %v27_v5  ;;  %v934_v8 = vld [vmem:[%s1270_s4] sm:$0xff]   ;;  %v936_v11 = vld [vmem:[%s1270_s4 + $0x8] sm:$0xff]   ;;  %v938_v13 = vld [vmem:[%s1270_s4 + $0x10] sm:$0xff]   ;;  %v1098_v26 = vshrl.u32 %v36_v25, 7  ;;  %v966_v56 = vmov 2475754826  }
   0x4   :  { %72 = vmatprep.subr.bf16.mxu0 %v931_v3  ;;  %v935_v10 = vld [vmem:[%s1271_s3] sm:$0xff]   ;;  %v937_v12 = vld [vmem:[%s1271_s3 + $0x8] sm:$0xff]   ;;  %v939_v14 = vld [vmem:[%s1271_s3 + $0x10] sm:$0xff]   ;;  %v967_v58 = vmov 2131351028   ;;  %s973_s27 = smov 116  }
   0x5   :  { %887 = vmatpush3.bf16.msra.mxu1 %v935_v10  ;;  %v940_v15 = vld [vmem:[%s1270_s4 + $0x18] sm:$0xff]   ;;  %v942_v17 = vld [vmem:[%s1270_s4 + $0x20] sm:$0xff]   ;;  %v944_v19 = vld [vmem:[%s1270_s4 + $0x28] sm:$0xff]   ;;  %v42_v27 = vsub.s32 1, %v1098_v26  ;;  %v968_v60 = vmov 2102212464  }
   0x6   :  { %888 = vmatprep.subr.bf16.mxu1 %v963_v9  ;;  %v941_v16 = vld [vmem:[%s1271_s3 + $0x18] sm:$0xff]   ;;  %v943_v18 = vld [vmem:[%s1271_s3 + $0x20] sm:$0xff]   ;;  %v945_v20 = vld [vmem:[%s1271_s3 + $0x28] sm:$0xff]   ;;  %v969_v1 = vmov 920167782  }
   0x7   :  { %73 = vmatpush1.bf16.msra.mxu0 %v933_v4  ;;  %v946_v21 = vld [vmem:[%s1270_s4 + $0x30] sm:$0xff]   ;;  %v948_v23 = vld [vmem:[%s1270_s4 + $0x38] sm:$0xff]   ;;  %v1104_v28 = vld [vmem:[%s1272_s2] sm:$0x3]  ;;  %v970_v5 = vmov 1326507024  }
   0x8   :  { %866 = vmatprep.subr.bf16.mxu0 %v963_v9  ;;  %v947_v22 = vld [vmem:[%s1271_s3 + $0x30] sm:$0xff]   ;;  %v949_v24 = vld [vmem:[%s1271_s3 + $0x38] sm:$0xff]   ;;  %v43_v29 = vrot.slane %v1104_v28, %v42_v27 }
   0x9   :  { %889 = vmatpush3.bf16.msra.mxu1 %v937_v12 }
   0xa   :  { %815 = vmatmul.mubr.msk.bf16.vlgmr.msra.gmra.mrb[0].mxu0 %vm66_vm0, %v29_v7  ;;  %890 = vmatprep.subr.bf16.mxu1 %v963_v9 }
   0xb   :  { %867 = vmatpush3.bf16.msra.mxu0 %v934_v8  ;;  %882 = vmatprep.mubr.msk.bf16.mxu0 %vm964_vm1, %v963_v9 }
   0xc   :  { %868 = vmatprep.subr.bf16.mxu0 %v963_v9 }
   0xd   :  { %891 = vmatpush3.bf16.msra.mxu1 %v939_v14 }
   0xe   :  { %892 = vmatprep.subr.bf16.mxu1 %v963_v9 }
   0xf   :  { %869 = vmatpush3.bf16.msra.mxu0 %v936_v11 }
  0x10   :  { %870 = vmatprep.subr.bf16.mxu0 %v963_v9 }
  0x11   :  { %893 = vmatpush3.bf16.msra.mxu1 %v941_v16 }
  0x12   :  { %894 = vmatprep.subr.bf16.mxu1 %v963_v9 }
  0x13   :  { %871 = vmatpush3.bf16.msra.mxu0 %v938_v13 }
  0x14   :  { %872 = vmatprep.subr.bf16.mxu0 %v963_v9 }
  0x15   :  { %895 = vmatpush3.bf16.msra.mxu1 %v943_v18 }
  0x16   :  { %896 = vmatprep.subr.bf16.mxu1 %v963_v9 }
  0x17   :  { %873 = vmatpush3.bf16.msra.mxu0 %v940_v15 }
  0x18   :  { %874 = vmatprep.subr.bf16.mxu0 %v963_v9 }
  0x19   :  { %897 = vmatpush3.bf16.msra.mxu1 %v945_v20 }
  0x1a   :  { %898 = vmatprep.subr.bf16.mxu1 %v963_v9 }
  0x1b   :  { %875 = vmatpush3.bf16.msra.mxu0 %v942_v17 }
  0x1c   :  { %876 = vmatprep.subr.bf16.mxu0 %v963_v9 }
  0x1d   :  { %899 = vmatpush3.bf16.msra.mxu1 %v947_v22 }
  0x1e   :  { %900 = vmatprep.subr.bf16.mxu1 %v963_v9 }
  0x1f   :  { %877 = vmatpush3.bf16.msra.mxu0 %v944_v19 }
  0x20   :  { %878 = vmatprep.subr.bf16.mxu0 %v963_v9 }
  0x21   :  { %901 = vmatpush3.bf16.msra.mxu1 %v949_v24 }
  0x23   :  { %879 = vmatpush3.bf16.msra.mxu0 %v946_v21 }
  0x24   :  { %880 = vmatprep.subr.bf16.mxu0 %v963_v9 }
  0x27   :  { %881 = vmatpush3.bf16.msra.mxu0 %v948_v23 }
  0xdd   :  { %v1107_v30 = vpop.f32.mrb[0].mxu0 }
  0xde   :  { %v106_v31 = vpop.f32.mrb[1].mxu0 }
  0xdf   :  { %v1109_v32 = vadd.f32 %v106_v31, %v43_v29  ;;  %v1111_v33 = vpop.f32.mrb[2].mxu0 }
  0xe0   :  { %v110_v34 = vpop.f32.mrb[3].mxu0 }
  0xe1   :  { %v119_v35 = vand.u32 2147483647, %v1109_v32  ;;  %v122_v36 = vand.u32 2139095040, %v1109_v32  ;;  %v1115_v37 = vadd.f32 %v110_v34, %v43_v29  ;;  %vm121_vm0 = vcmp.lt.s32.totalorder %v1109_v32, 0 }
  0xe3   :  { %v123_v38 = vshrl.u32 %v122_v36, 23  ;;  %v225_v39 = vand.u32 2139095040, %v1115_v37  ;;  %v126_v41 = vand.u32 8388607, %v119_v35  ;;  %v222_v46 = vand.u32 2147483647, %v1115_v37 }
  0xe4   :  { %vm120_vm1 = vcmp.le.f32.partialorder %v119_v35, 0.7853982 }
  0xe5   :  { %v816_v40 = vadd.s32 4294967169, %v123_v38  ;;  %v226_v42 = vshrl.u32 %v225_v39, 23  ;;  %v127_v45 = vor.u32 8388608, %v126_v41  ;;  %v229_v53 = vand.u32 8388607, %v222_v46 }
  0xe7   :  { %v129_v43 = vadd.s32 1, %v816_v40  ;;  %v820_v44 = vadd.s32 4294967169, %v226_v42  ;;  %v1121_v52 = vshll.u32 %v127_v45, 8  ;;  %v230_v21 = vor.u32 8388608, %v229_v53 }
  0xe9   :  { %vm130_vm2 = vcmp.gt.s32.totalorder %v129_v43, 0  ;;  %v232_v48 = vadd.s32 1, %v820_v44  ;;  %v270_v41 = vshll.u32 %v230_v21, 8 }
  0xea   :  { %v131_v47 = vsel %vm130_vm2, %v129_v43, 0  ;;  %vm224_vm2 = vcmp.lt.s32.totalorder %v1115_v37, 0 }
  0xeb   :  { %v133_v49 = vand.u32 31, %v131_v47  ;;  %v132_v50 = vshrl.u32 %v131_v47, 5  ;;  %vm233_vm3 = vcmp.gt.s32.totalorder %v232_v48, 0 }
  0xec   :  { %v234_v13 = vsel %vm233_vm3, %v232_v48, 0  ;;  %vm223_vm3 = vcmp.le.f32.partialorder %v222_v46, 0.7853982 }
  0xed   :  { %v134_v51 = vsub.s32 32, %v133_v49  ;;  %v136_v55 = vshll.u32 %v965_v54, %v133_v49  ;;  %v139_v57 = vshll.u32 %v966_v56, %v133_v49  ;;  %v142_v59 = vshll.u32 %v967_v58, %v133_v49 }
  0xee   :  { %v145_v61 = vshll.u32 %v968_v60, %v133_v49  ;;  %v148_v2 = vshll.u32 %v969_v1, %v133_v49  ;;  %vm151_vm4 = vcmp.lt.s32.totalorder %v132_v50, 1  ;;  %vm153_vm5 = vcmp.lt.s32.totalorder %v132_v50, 3 }
  0xef   :  { %v137_v62 = vshrl.u32 %v966_v56, %v134_v51  ;;  %v140_v63 = vshrl.u32 %v967_v58, %v134_v51  ;;  %v143_v0 = vshrl.u32 %v968_v60, %v134_v51  ;;  %v135_v3 = vshrl.u32 %v965_v54, %v134_v51 }
  0xf0   :  { %v146_v4 = vshrl.u32 %v969_v1, %v134_v51  ;;  %v149_v6 = vshrl.u32 %v970_v5, %v134_v51  ;;  %vm154_vm6 = vcmp.lt.s32.totalorder %v132_v50, 4  ;;  %vm152_vm7 = vcmp.lt.s32.totalorder %v132_v50, 2 }
  0xf1   :  { %v138_v7 = vor.u32 %v137_v62, %v136_v55  ;;  %v141_v8 = vor.u32 %v140_v63, %v139_v57  ;;  %v144_v10 = vor.u32 %v143_v0, %v142_v59  ;;  %v236_v24 = vand.u32 31, %v234_v13 }
  0xf2   :  { %v147_v11 = vor.u32 %v146_v4, %v145_v61  ;;  %v150_v12 = vor.u32 %v149_v6, %v148_v2  ;;  %v235_v39 = vshrl.u32 %v234_v13, 5 }
  0xf3   :  { %v155_v14 = vsel %vm151_vm4, %v135_v3, %v138_v7  ;;  %v156_v15 = vsel %vm154_vm6, %v144_v10, 2102212464  ;;  %v159_v16 = vsel %vm151_vm4, %v138_v7, %v141_v8  ;;  %v163_v17 = vsel %vm151_vm4, %v141_v8, %v144_v10 }
  0xf4   :  { %v157_v18 = vsel %vm153_vm5, %v141_v8, %v156_v15  ;;  %v160_v19 = vsel %vm154_vm6, %v147_v11, 920167782  ;;  %v164_v20 = vsel %vm154_vm6, %v150_v12, 1326507024  ;;  %v237_v40 = vsub.s32 32, %v236_v24 }
  0xf5   :  { %v161_v22 = vsel %vm153_vm5, %v144_v10, %v160_v19  ;;  %v165_v23 = vsel %vm153_vm5, %v147_v11, %v164_v20  ;;  %v158_v25 = vsel %vm152_vm7, %v155_v14, %v157_v18  ;;  %v239_v43 = vshll.u32 %v965_v54, %v236_v24 }
  0xf6   :  { %v162_v27 = vsel %vm152_vm7, %v159_v16, %v161_v22  ;;  %v166_v29 = vsel %vm152_vm7, %v163_v17, %v165_v23  ;;  %v174_v42 = vmul.u32 %v1121_v52, %v158_v25  ;;  %v242_v44 = vshll.u32 %v966_v56, %v236_v24 }
  0xf7   :  { %v1129_v31 = vmul.u32.u64.low %v1121_v52, %v166_v29  ;;  %v1130_v34 = vmul.u32.u64.high %v1121_v52, %v166_v29, %v1129_v31  ;;  %v1133_v36 = vmul.u32.u64.low %v1121_v52, %v162_v27  ;;  %v1134_v38 = vmul.u32.u64.high %v1121_v52, %v162_v27, %v1133_v36 }
  0xf8   :  { %v245_v45 = vshll.u32 %v967_v58, %v236_v24  ;;  %v240_v47 = vshrl.u32 %v966_v56, %v237_v40  ;;  %v243_v48 = vshrl.u32 %v967_v58, %v237_v40  ;;  %v246_v49 = vshrl.u32 %v968_v60, %v237_v40 }
  0xf9   :  { %v248_v50 = vshll.u32 %v968_v60, %v236_v24  ;;  %vm176_vm8 = vc.u32 %v1130_v34, %v1133_v36  ;;  %v177_v51 = vadd.s32 1, %v1134_v38  ;;  %v249_v53 = vshrl.u32 %v969_v1, %v237_v40 }
  0xfa   :  { %v251_v55 = vshll.u32 %v969_v1, %v236_v24  ;;  %v241_v57 = vor.u32 %v240_v47, %v239_v43  ;;  %v244_v59 = vor.u32 %v243_v48, %v242_v44  ;;  %v247_v61 = vor.u32 %v246_v49, %v245_v45 }
  0xfb   :  { %v252_v62 = vshrl.u32 %v970_v5, %v237_v40  ;;  %v178_v52 = vsel %vm176_vm8, %v177_v51, %v1134_v38  ;;  %v250_v63 = vor.u32 %v249_v53, %v248_v50  ;;  %vm254_vm9 = vcmp.lt.s32.totalorder %v235_v39, 1 }
  0xfc   :  { %vm257_vm10 = vcmp.lt.s32.totalorder %v235_v39, 4  ;;  %v179_v56 = vadd.s32 %v178_v52, %v174_v42  ;;  %vm256_vm11 = vcmp.lt.s32.totalorder %v235_v39, 3  ;;  %v238_v0 = vshrl.u32 %v965_v54, %v237_v40 }
  0xfd   :  { %v253_v58 = vor.u32 %v252_v62, %v251_v55  ;;  %v259_v60 = vsel %vm257_vm10, %v247_v61, 2102212464  ;;  %v262_v2 = vsel %vm254_vm9, %v241_v57, %v244_v59  ;;  %v263_v3 = vsel %vm257_vm10, %v250_v63, 920167782 }
  0xfe   :  { %v266_v4 = vsel %vm254_vm9, %v244_v59, %v247_v61  ;;  %v180_v6 = vadd.s32 536870912, %v179_v56  ;;  %vm255_vm12 = vcmp.lt.s32.totalorder %v235_v39, 2  ;;  %v264_v1 = vsel %vm256_vm11, %v247_v61, %v263_v3 }
  0xff   :  { %v267_v7 = vsel %vm257_vm10, %v253_v58, 1326507024  ;;  %v258_v8 = vsel %vm254_vm9, %v238_v0, %v241_v57  ;;  %v260_v5 = vsel %vm256_vm11, %v244_v59, %v259_v60  ;;  %v265_v10 = vsel %vm255_vm12, %v262_v2, %v264_v1 }
 0x100   :  { %v268_v11 = vsel %vm256_vm11, %v250_v63, %v267_v7  ;;  %v181_v12 = vshrl.u32 %v180_v6, 30  ;;  %v1144_v14 = vmul.u32.u64.low %v270_v41, %v265_v10  ;;  %v1145_v15 = vmul.u32.u64.high %v270_v41, %v265_v10, %v1144_v14 }
 0x101   :  { %v269_v13 = vsel %vm255_vm12, %v266_v4, %v268_v11  ;;  %v261_v18 = vsel %vm255_vm12, %v258_v8, %v260_v5  ;;  %v175_v43 = vadd.s32 %v1133_v36, %v1130_v34  ;;  %v38_v47 = vsub.s32 0, %v1098_v26 }
 0x102   :  { %v1147_v16 = vmul.u32.u64.low %v270_v41, %v269_v13  ;;  %v1148_v17 = vmul.u32.u64.high %v270_v41, %v269_v13, %v1147_v16  ;;  %v182_v54 = vshll.u32 %v181_v12, 30  ;;  %v280_v20 = vadd.s32 1, %v1145_v15 }
 0x103   :  { %v277_v21 = vmul.u32 %v270_v41, %v261_v18  ;;  %v39_v59 = vrot.slane %v1104_v28, %v38_v47  ;;  %vm211_vm4 = vweird.f32 %v1109_v32 }
 0x104   :  { %v183_v19 = vsub.s32 %v179_v56, %v182_v54  ;;  %vm279_vm13 = vc.u32 %v1148_v17, %v1144_v14  ;;  %v205_v56 = vsub.s32 4, %v181_v12  ;;  %v278_v26 = vadd.s32 %v1144_v14, %v1148_v17 }
 0x105   :  { %v281_v23 = vsel %vm279_vm13, %v280_v20, %v1145_v15  ;;  %v105_v34 = vadd.f32 %v1107_v30, %v39_v59  ;;  %v109_v13 = vadd.f32 %v1111_v33, %v39_v59 }
 0x106   :  { %v185_v22 = vsub.s32 0, %v183_v19  ;;  %v282_v24 = vadd.s32 %v281_v23, %v277_v21  ;;  %v206_v7 = vsel %vm121_vm0, %v205_v56, %v181_v12 }
 0x107   :  { %v113_v6 = vmul.f32 1.442695, %v105_v34  ;;  %v208_v10 = vsel %vm120_vm1, 0, %v206_v7  ;;  %v115_v18 = vmul.f32 1.442695, %v109_v13 }
 0x108   :  { %v817_v25 = vmin.u32 %v185_v22, %v183_v19  ;;  %v283_v27 = vadd.s32 536870912, %v282_v24  ;;  %v421_v16 = vadd.s32 3, %v208_v10 }
 0x10a   :  { %v187_v29 = vclz %v817_v25  ;;  %v284_v31 = vshrl.u32 %v283_v27, 30  ;;  %v422_v12 = vand.u32 3, %v421_v16 }
 0x10c   :  { %v818_v38 = vadd.s32 4294967294, %v187_v29  ;;  %v285_v39 = vshll.u32 %v284_v31, 30  ;;  %v308_v54 = vsub.s32 4, %v284_v31  ;;  %vm427_vm6 = vcmp.eq.s32.totalorder %v422_v12, 2 }
 0x10d   :  { %vm424_vm7 = vcmp.eq.s32.totalorder %v422_v12, 0  ;;  %vm423_vm9 = vcmp.lt.s32.totalorder %v422_v12, 2  ;;  %v795_v12 = vld [vmem:[%s1274_s5] sm:$0x7] }
 0x10e   :  { %vm819_vm14 = vcmp.lt.s32.totalorder %v818_v38, 0  ;;  %v286_v42 = vsub.s32 %v282_v24, %v285_v39  ;;  %v309_v21 = vsel %vm224_vm2, %v308_v54, %v284_v31 }
 0x10f   :  { %v190_v40 = vsel %vm819_vm14, 0, %v818_v38  ;;  %v311_v27 = vsel %vm223_vm3, 0, %v309_v21 }
 0x110   :  { %v191_v44 = vsub.s32 32, %v190_v40  ;;  %v195_v41 = vsub.s32 4294967266, %v190_v40  ;;  %v288_v45 = vsub.s32 0, %v286_v42  ;;  %v192_v48 = vshll.u32 %v183_v19, %v190_v40 }
 0x111   :  { %v212_v19 = vand.u32 3, %v208_v10 }
 0x112   :  { %v193_v49 = vshrl.u32 %v175_v43, %v191_v44  ;;  %v196_v50 = vadd.s32 127, %v195_v41  ;;  %v821_v51 = vmin.u32 %v288_v45, %v286_v42 }
 0x113   :  { %vm217_vm5 = vcmp.eq.s32.totalorder %v212_v19, 2  ;;  %vm214_vm8 = vcmp.eq.s32.totalorder %v212_v19, 0  ;;  %vm213_vm10 = vcmp.lt.s32.totalorder %v212_v19, 2 }
 0x114   :  { %v194_v53 = vor.u32 %v193_v49, %v192_v48  ;;  %v197_v55 = vshll.u32 %v196_v50, 23  ;;  %v290_v57 = vclz %v821_v51  ;;  %v315_v50 = vand.u32 3, %v311_v27 }
 0x116   :  { %v198_v61 = vor.u32 4788187, %v197_v55  ;;  %v822_v62 = vadd.s32 4294967294, %v290_v57  ;;  %v201_v63 = vcvt.s32.f32 %v194_v53  ;;  %vm320_vm12 = vcmp.eq.s32.totalorder %v315_v50, 2 }
 0x117   :  { %vm317_vm14 = vcmp.eq.s32.totalorder %v315_v50, 0 }
 0x118   :  { %v199_v52 = vand.u32 2147483647, %v198_v61  ;;  %vm823_vm15 = vcmp.lt.s32.totalorder %v822_v62, 0 }
 0x119   :  { %v293_v58 = vsel %vm823_vm15, 0, %v822_v62 }
 0x11a   :  { %v202_v36 = vmul.f32 %v201_v63, %v199_v52  ;;  %v294_v60 = vsub.s32 32, %v293_v58  ;;  %v298_v0 = vsub.s32 4294967266, %v293_v58  ;;  %v295_v3 = vshll.u32 %v286_v42, %v293_v58 }
 0x11b   :  { %v525_v42 = vadd.s32 3, %v311_v27 }
 0x11c   :  { %v203_v2 = vxor.u32 2147483648, %v202_v36  ;;  %v296_v4 = vshrl.u32 %v278_v26, %v294_v60  ;;  %v299_v28 = vadd.s32 127, %v298_v0 }
 0x11d   :  { %v526_v49 = vand.u32 3, %v525_v42 }
 0x11e   :  { %v204_v1 = vsel %vm121_vm0, %v203_v2, %v202_v36  ;;  %v297_v8 = vor.u32 %v296_v4, %v295_v3  ;;  %v300_v5 = vshll.u32 %v299_v28, 23  ;;  %vm316_vm0 = vcmp.lt.s32.totalorder %v315_v50, 2 }
 0x11f   :  { %v207_v30 = vsel %vm120_vm1, %v1109_v32, %v204_v1  ;;  %vm531_vm11 = vcmp.eq.s32.totalorder %v526_v49, 2  ;;  %vm528_vm13 = vcmp.eq.s32.totalorder %v526_v49, 0  ;;  %vm527_vm15 = vcmp.lt.s32.totalorder %v526_v49, 2 }
 0x120   :  { %950 = vcosq.f32 %v207_v30  ;;  %v301_v11 = vor.u32 4788187, %v300_v5  ;;  %v304_v15 = vcvt.s32.f32 %v297_v8  ;;  %vm314_vm1 = vweird.f32 %v1115_v37 }
 0x121   :  { %952 = vsinq.f32 %v207_v30 }
 0x122   :  { %954 = vpow2.f32 %v113_v6  ;;  %v302_v14 = vand.u32 2147483647, %v301_v11 }
 0x123   :  { %956 = vpow2.f32 %v115_v18 }
 0x124   :  { %v305_v17 = vmul.f32 %v304_v15, %v302_v14 }
 0x126   :  { %v306_v35 = vxor.u32 2147483648, %v305_v17 }
 0x128   :  { %v307_v20 = vsel %vm224_vm2, %v306_v35, %v305_v17  ;;  %vm752_vm2 = vcmask 26624  }
 0x129   :  { %v310_v33 = vsel %vm223_vm3, %v1115_v37, %v307_v20  ;;  %753 = vst.msk [vmem:[%s1273_s7 + $0x8] sm:$0x7] %vm752_vm2, %v963_v9  ;;  %754 = vst.msk [vmem:[%s1273_s7 + $0x18] sm:$0x7] %vm752_vm2, %v963_v9  ;;  %vm749_vm3 = vcmask 31744  }
 0x12a   :  { %v951_v22 = vpop.eup %950  ;;  %958 = vcosq.f32 %v310_v33 }
 0x12b   :  { %v953_v23 = vpop.eup %952  ;;  %v218_v24 = vxor.u32 2147483648, %v951_v22  ;;  %960 = vsinq.f32 %v310_v33 }
 0x12c   :  { %v955_v25 = vpop.eup %954  ;;  %v215_v29 = vxor.u32 2147483648, %v953_v23 }
 0x12d   :  { %v429_v38 = vsel %vm427_vm6, %v218_v24, %v953_v23  ;;  %v219_v46 = vsel %vm217_vm5, %v218_v24, %v953_v23  ;;  %v117_v40 = vmin.f32 %v955_v25, 100.0  ;;  %v957_v51 = vpop.eup %956 }
 0x12e   :  { %v426_v31 = vsel %vm424_vm7, %v951_v22, %v215_v29  ;;  %v216_v39 = vsel %vm214_vm8, %v951_v22, %v215_v29  ;;  %v118_v63 = vmin.f32 %v957_v51, 100.0 }
 0x12f   :  { %v430_v43 = vsel %vm423_vm9, %v426_v31, %v429_v38  ;;  %v220_v44 = vsel %vm213_vm10, %v216_v39, %v219_v46  ;;  %v802_v46 = vld [vmem:[%s1275_s6] sm:$0x7] }
 0x130   :  { %v431_v41 = vsel %vm211_vm4, nan, %v430_v43  ;;  %v221_v45 = vsel %vm211_vm4, nan, %v220_v44 }
 0x131   :  { %v536_v47 = vmul.f32 %v431_v41, %v117_v40  ;;  %v325_v48 = vmul.f32 %v221_v45, %v117_v40 }
 0x134   :  { %v959_v53 = vpop.eup %958 }
 0x135   :  { %v961_v55 = vpop.eup %960  ;;  %v321_v57 = vxor.u32 2147483648, %v959_v53 }
 0x136   :  { %v318_v59 = vxor.u32 2147483648, %v961_v55 }
 0x137   :  { %v533_v61 = vsel %vm531_vm11, %v321_v57, %v961_v55  ;;  %v322_v62 = vsel %vm320_vm12, %v321_v57, %v961_v55 }
 0x138   :  { %v530_v52 = vsel %vm528_vm13, %v959_v53, %v318_v59  ;;  %v319_v32 = vsel %vm317_vm14, %v959_v53, %v318_v59 }
 0x139   :  { %v534_v34 = vsel %vm527_vm15, %v530_v52, %v533_v61  ;;  %v323_v36 = vsel %vm316_vm0, %v319_v32, %v322_v62 }
 0x13a   :  { %v535_v56 = vsel %vm314_vm1, nan, %v534_v34  ;;  %v324_v58 = vsel %vm314_vm1, nan, %v323_v36 }
 0x13b   :  { %v537_v26 = vmul.f32 %v535_v56, %v118_v63  ;;  %v326_v60 = vmul.f32 %v324_v58, %v118_v63 }
 0x13d   :  { %v538_v0 = vpack.c.bf16 %v537_v26, %v536_v47  ;;  %v327_v2 = vpack.c.bf16 %v326_v60, %v325_v48 }
 0x13f   :  { %883 = vmatmul.mubr.bf16.vlgmr.msra.gmra.mrb[4].mxu0 %v538_v0  ;;  %903 = vmatmul.mubr.bf16.vlgmr.msra.gmra.mrb[0].mxu1 %v327_v2 }
 0x212   :  { %v653_v37 = vpop.f32.mrb[4].mxu0  ;;  %v742_v3 = vpop.f32.mrb[0].mxu1 }
 0x213   :  { %v743_v4 = vadd.f32 %v742_v3, %v653_v37  ;;  %v884_v28 = vpop.f32.mrb[5].mxu0  ;;  %v904_v6 = vpop.f32.mrb[1].mxu1 }
 0x214   :  { %v656_v1 = vpop.f32.mrb[6].mxu0  ;;  %v745_v7 = vpop.f32.mrb[2].mxu1 }
 0x215   :  { %750 = vst.msk [vmem:[%s1273_s7] sm:$0xff] %vm749_vm3, %v743_v4  ;;  %v746_v30 = vadd.f32 %v745_v7, %v656_v1  ;;  %v885_v8 = vpop.f32.mrb[7].mxu0  ;;  %771 = vrot.lane.b32.xlu1 %v743_v4, %s971_s23  ;;  %759 = vrot.lane.b32.xlu0 %v743_v4, %s972_s24  ;;  %v905_v9 = vpop.f32.mrb[3].mxu1 }
 0x217   :  { %751 = vst.msk [vmem:[%s1273_s7 + $0x10] sm:$0xff] %vm749_vm3, %v746_v30 }
 0x219   :  { %773 = vrot.lane.b32.xlu1 %v746_v30, %s971_s23  ;;  %761 = vrot.lane.b32.xlu0 %v746_v30, %s972_s24 }
 0x21c   :  { %v755_v10 = vld [vmem:[%s1273_s7 + $0x1] sm:$0xff] }
 0x21d   :  { %785 = vrot.lane.b32.xlu1 %v746_v30, %s973_s27  ;;  %783 = vrot.lane.b32.xlu0 %v743_v4, %s973_s27 }
 0x21e   :  { %v756_v14 = vld [vmem:[%s1273_s7 + $0x11] sm:$0xff] }
 0x287   :  { %v760_v5 = vpop.permute.xlu0 %759  ;;  %v772_v16 = vpop.permute.xlu1 %771 }
 0x288   :  { %v765_v11 = vadd.f32 %v760_v5, %v755_v10 }
 0x28a   :  { %767 = vst.msk [vmem:[%s1273_s7 + $0x1] sm:$0xff] %vm749_vm3, %v765_v11 }
 0x28b   :  { %v762_v13 = vpop.permute.xlu0 %761  ;;  %v774_v18 = vpop.permute.xlu1 %773 }
 0x28c   :  { %v766_v15 = vadd.f32 %v762_v13, %v756_v14 }
 0x28e   :  { %768 = vst.msk [vmem:[%s1273_s7 + $0x11] sm:$0xff] %vm749_vm3, %v766_v15 }
 0x28f   :  { %v784_v22 = vpop.permute.xlu0 %783  ;;  %v786_v24 = vpop.permute.xlu1 %785 }
 0x291   :  { %v769_v17 = vld [vmem:[%s1273_s7 + $0x2] sm:$0xff] }
 0x292   :  { %v777_v54 = vadd.f32 %v772_v16, %v769_v17 }
 0x294   :  { %779 = vst.msk [vmem:[%s1273_s7 + $0x2] sm:$0xff] %vm749_vm3, %v777_v54 }
 0x295   :  { %v770_v35 = vld [vmem:[%s1273_s7 + $0x12] sm:$0xff] }
 0x296   :  { %v778_v19 = vadd.f32 %v774_v18, %v770_v35 }
 0x298   :  { %780 = vst.msk [vmem:[%s1273_s7 + $0x12] sm:$0xff] %vm749_vm3, %v778_v19 }
 0x29b   :  { %v781_v20 = vld [vmem:[%s1273_s7 + $0x3] sm:$0xff]  ;;  %v793_v21 = vld [vmem:[%s1273_s7] sm:$0x7] }
 0x29c   :  { %v796_v33 = vmul.f32 %v795_v12, %v793_v21  ;;  %v789_v23 = vadd.f32 %v784_v22, %v781_v20 }
 0x29e   :  { %798 = vst.msk [vmem:[%s1273_s7] sm:$0x7] %vm752_vm2, %v796_v33 }
 0x29f   :  { %791 = vst.msk [vmem:[%s1273_s7 + $0x3] sm:$0xff] %vm749_vm3, %v789_v23  ;;  %v782_v25 = vld [vmem:[%s1273_s7 + $0x13] sm:$0xff]  ;;  %v794_v27 = vld [vmem:[%s1273_s7 + $0x10] sm:$0x7] }
 0x2a0   :  { %v790_v29 = vadd.f32 %v786_v24, %v782_v25  ;;  %v797_v38 = vmul.f32 %v795_v12, %v794_v27 }
 0x2a2   :  { %792 = vst.msk [vmem:[%s1273_s7 + $0x13] sm:$0xff] %vm749_vm3, %v790_v29 }
 0x2a3   :  { %799 = vst.msk [vmem:[%s1273_s7 + $0x10] sm:$0x7] %vm752_vm2, %v797_v38 }
 0x2a6   :  { %v800_v31 = vld [vmem:[%s1273_s7 + $0x8] sm:$0x7] }
 0x2a7   :  { %v803_v39 = vmul.f32 %v802_v46, %v800_v31 }
 0x2a9   :  { %805 = vst.msk [vmem:[%s1273_s7 + $0x8] sm:$0x7] %vm752_vm2, %v803_v39  ;;  %v801_v40 = vld [vmem:[%s1273_s7 + $0x18] sm:$0x7] }
 0x2aa   :  { %v804_v42 = vmul.f32 %v802_v46, %v801_v40 }
 0x2ac   :  { %806 = vst.msk [vmem:[%s1273_s7 + $0x18] sm:$0x7] %vm752_vm2, %v804_v42 }

</bundles_post_ra>
